<compile_context>
chip_gen: v6e
topology: v6e:2x2x1
jax: 0.10.0
libtpu: 0.0.40
codegen_flags: <defaults>
</compile_context>

<pallas_src>
import jax
import jax.numpy as jnp
from jax import lax
from jax.experimental import pallas as pl
from jax.experimental.pallas import tpu as pltpu

EPS = 1e-5                        # InstanceNorm3d default eps
INV_SQRT2 = 0.7071067811865476    # exact GELU: 0.5*x*(1+erf(x/sqrt(2)))
VMEM_LIMIT_BYTES = 48 * 1024 * 1024   # explicit scoped-VMEM budget; < physical on v7x/v6e/v5e


# ----------------------------------------------------------------------------
# Tiling helpers
# ----------------------------------------------------------------------------
def _choose_td(D, HW, Cin, Cout, budget_bytes=24 * 1024 * 1024):
    """Pick a depth tile Td: Td | D and (Td*HW) % 128 == 0 (lane-dense), biggest tile
    whose rough per-step VMEM footprint (incl. double buffering) fits the budget."""
    valid = [td for td in range(1, D + 1)
             if D % td == 0 and (td == D or (td * HW) % 128 == 0)]
    fit = [td for td in valid
           if 4 * td * HW * (4 * Cin + 4 * Cout + 24) <= budget_bytes]
    return max(fit) if fit else min(valid)


def _halo_block(Ts, HW):
    """Smallest lane-valid block (divides Ts, multiple of 128 or == Ts, >= HW) that
    covers the first H*W lanes of the next depth tile (upper depth halo DMA)."""
    cands = [b for b in range(1, Ts + 1)
             if Ts % b == 0 and b >= HW and (b % 128 == 0 or b == Ts)]
    return min(cands)


def _make_hw_masks(td, H, W):
    """(9, Ts) f32 masks: mask[kh*3+kw, s] = 1 iff (h+kh-1, w+kw-1) is inside the H/W
    extent for the output position s (zero-padding of the 3x3x3 conv in H and W)."""
    HW = H * W
    Ts = td * HW
    s = jnp.arange(Ts, dtype=jnp.int32)
    h = (s % HW) // W
    w = s % W
    rows = []
    for kh in range(3):
        for kw in range(3):
            oh, ow = kh - 1, kw - 1
            valid = (h + oh >= 0) & (h + oh < H) & (w + ow >= 0) & (w + ow < W)
            rows.append(valid.astype(jnp.float32))
    return jnp.stack(rows, axis=0)


# ----------------------------------------------------------------------------
# Kernel A: streaming InstanceNorm statistics of conv_0's raw output z = W0 @ x
# (one pass over x, z never written to HBM)
# ----------------------------------------------------------------------------
def _conv0_stats(x_flat, w0, *, Ts):
    N, Cin, S = x_flat.shape
    Cout = w0.shape[0]
    nT = S // Ts
    inv_s = 1.0 / S

    def kernel(x_ref, w0_ref, mean_ref, rstd_ref, ssum, ssq):
        t = pl.program_id(1)

        @pl.when(t == 0)
        def _init():
            ssum[...] = jnp.zeros_like(ssum)
            ssq[...] = jnp.zeros_like(ssq)

        z = jnp.dot(w0_ref[...], x_ref[0], preferred_element_type=jnp.float32)
        ssum[...] += jnp.sum(z, axis=1, keepdims=True)
        ssq[...] += jnp.sum(z * z, axis=1, keepdims=True)

        @pl.when(t == pl.num_programs(1) - 1)
        def _fin():
            mean = ssum[...] * inv_s
            var = ssq[...] * inv_s - mean * mean
            mean_ref[0] = mean
            rstd_ref[0] = lax.rsqrt(jnp.maximum(var, 0.0) + EPS)

    return pl.pallas_call(
        kernel,
        out_shape=(jax.ShapeDtypeStruct((N, Cout, 1), jnp.float32),
                   jax.ShapeDtypeStruct((N, Cout, 1), jnp.float32)),
        grid=(N, nT),
        in_specs=[
            pl.BlockSpec((1, Cin, Ts), lambda n, t: (n, 0, t)),
            pl.BlockSpec((Cout, Cin), lambda n, t: (0, 0)),
        ],
        out_specs=(
            pl.BlockSpec((1, Cout, 1), lambda n, t: (n, 0, 0)),
            pl.BlockSpec((1, Cout, 1), lambda n, t: (n, 0, 0)),
        ),
        scratch_shapes=[pltpu.VMEM((Cout, 1), jnp.float32),
                        pltpu.VMEM((Cout, 1), jnp.float32)],
        compiler_params=pltpu.CompilerParams(
            dimension_semantics=("parallel", "arbitrary"),
            vmem_limit_bytes=VMEM_LIMIT_BYTES),
    )(x_flat, w0)


# ----------------------------------------------------------------------------
# Kernel B: fused conv_0 (1x1x1 + IN + GELU, recomputed on the tile) followed by the
# 3x3x3 conv as 27 accumulated (Cout,Cout)@(Cout,Ts) MXU matmuls over shifted windows
# of a depth-halo'd VMEM slab, plus streaming stats of conv_2's raw output.
# Lower depth halo is carried in scratch across (sequential) depth steps; upper depth
# halo uses a minimal halo-sized DMA of x.
# ----------------------------------------------------------------------------
def _fused_conv0_conv2(x_flat, w0, mean0, rstd0, g0, b0, w2t, masks, *, D, H, W, td):
    N, Cin, S = x_flat.shape
    Cout = w0.shape[0]
    HW = H * W
    Ts = td * HW
    nT = D // td
    Bn = _halo_block(Ts, HW)              # upper-halo DMA block (lanes)
    hpt = Ts // Bn                        # halo blocks per depth tile
    inv_s = 1.0 / S
    P = W + 1                             # zero pad on each side of the lane axis
    yb_len = Ts + 2 * HW + 2 * P          # depth halo (1 slice each side) + lane pads

    def kernel(xc_ref, xn_ref, w0_ref, m0_ref, r0_ref, g0_ref, b0_ref,
               w2_ref, msk_ref, u_ref, m2_ref, r2_ref, ybuf, yprev, ssum, ssq):
        t = pl.program_id(1)
        nt = pl.num_programs(1)

        @pl.when(t == 0)
        def _init():
            ybuf[...] = jnp.zeros_like(ybuf)     # keeps the zero pads zero for all taps
            yprev[...] = jnp.zeros_like(yprev)   # depth zero-pad below the volume
            ssum[...] = jnp.zeros_like(ssum)
            ssq[...] = jnp.zeros_like(ssq)

        w0v = w0_ref[...]
        m0 = m0_ref[0]
        r0 = r0_ref[0]
        g0v = g0_ref[...]
        b0v = b0_ref[...]

        def conv0_act(xpiece):               # (Cin, L) -> GELU(IN(W0 @ xpiece))  (Cout, L)
            z = jnp.dot(w0v, xpiece, preferred_element_type=jnp.float32)
            yv = (z - m0) * r0 * g0v + b0v
            return 0.5 * yv * (1.0 + lax.erf(yv * INV_SQRT2))

        # Current tile's conv_0 activation, plus the next tile's first depth slice
        # (upper halo).  Out-of-volume depth slices must be ZERO (conv_2 zero-pads the
        # activation and GELU(IN(0)) != 0), hence the scalar gate for the last tile.
        # The lower halo (previous tile's last depth slice) is carried in `yprev`.
        y_c = conv0_act(xc_ref[0])
        y_hi = conv0_act(xn_ref[0][:, :HW]) * (t < nt - 1).astype(jnp.float32)

        ybuf[:, P:P + HW] = yprev[...]
        ybuf[:, P + HW:P + HW + Ts] = y_c
        ybuf[:, P + HW + Ts:P + 2 * HW + Ts] = y_hi

        # 27-tap 3x3x3 conv: accumulate small MXU matmuls over shifted windows.
        acc = jnp.zeros((Cout, Ts), jnp.float32)
        for kd in range(3):
            for kh in range(3):
                for kw in range(3):
                    tap = (kd * 3 + kh) * 3 + kw
                    start = kd * HW + kh * W + kw
                    win = ybuf[:, start:start + Ts]
                    mi = kh * 3 + kw
                    if mi != 4:              # centre (oh=ow=0) needs no H/W mask
                        win = win * msk_ref[mi:mi + 1, :]
                    acc = acc + jnp.dot(w2_ref[tap], win,
                                        preferred_element_type=jnp.float32)

        u_ref[0] = acc
        ssum[...] += jnp.sum(acc, axis=1, keepdims=True)
        ssq[...] += jnp.sum(acc * acc, axis=1, keepdims=True)
        # Carry this tile's last depth slice as the next step's lower halo.
        yprev[...] = y_c[:, Ts - HW:]

        @pl.when(t == nt - 1)
        def _fin():
            mean = ssum[...] * inv_s
            var = ssq[...] * inv_s - mean * mean
            m2_ref[0] = mean
            r2_ref[0] = lax.rsqrt(jnp.maximum(var, 0.0) + EPS)

    flops = 2 * N * S * Cout * (Cin + 27 * Cout)
    cost = pl.CostEstimate(
        flops=flops,
        transcendentals=N * S * Cout,
        bytes_accessed=4 * N * (S * Cin + nT * Bn * Cin + S * Cout))

    return pl.pallas_call(
        kernel,
        out_shape=(jax.ShapeDtypeStruct((N, Cout, S), jnp.float32),
                   jax.ShapeDtypeStruct((N, Cout, 1), jnp.float32),
                   jax.ShapeDtypeStruct((N, Cout, 1), jnp.float32)),
        grid=(N, nT),
        in_specs=[
            # current depth tile of x
            pl.BlockSpec((1, Cin, Ts), lambda n, t: (n, 0, t)),
            # minimal halo block covering the next tile's first depth slice (clamped at
            # the end; the clamped contribution is zeroed in-kernel).
            pl.BlockSpec((1, Cin, Bn),
                         lambda n, t: (n, 0, jnp.minimum(t + 1, nT - 1) * hpt)),
            pl.BlockSpec((Cout, Cin), lambda n, t: (0, 0)),          # W0 (resident)
            pl.BlockSpec((1, Cout, 1), lambda n, t: (n, 0, 0)),      # mean0
            pl.BlockSpec((1, Cout, 1), lambda n, t: (n, 0, 0)),      # rstd0
            pl.BlockSpec((Cout, 1), lambda n, t: (0, 0)),            # gamma0 (resident)
            pl.BlockSpec((Cout, 1), lambda n, t: (0, 0)),            # beta0  (resident)
            pl.BlockSpec((27, Cout, Cout), lambda n, t: (0, 0, 0)),  # W2 taps (resident)
            pl.BlockSpec((9, Ts), lambda n, t: (0, 0)),              # H/W masks (resident)
        ],
        out_specs=(
            pl.BlockSpec((1, Cout, Ts), lambda n, t: (n, 0, t)),     # raw conv_2 output
            pl.BlockSpec((1, Cout, 1), lambda n, t: (n, 0, 0)),      # mean2
            pl.BlockSpec((1, Cout, 1), lambda n, t: (n, 0, 0)),      # rstd2
        ),
        scratch_shapes=[
            pltpu.VMEM((Cout, yb_len), jnp.float32),                 # halo'd y slab
            pltpu.VMEM((Cout, HW), jnp.float32),                     # carried lower halo
            pltpu.VMEM((Cout, 1), jnp.float32),                      # sum accumulator
            pltpu.VMEM((Cout, 1), jnp.float32),                      # sumsq accumulator
        ],
        compiler_params=pltpu.CompilerParams(
            dimension_semantics=("parallel", "arbitrary"),
            vmem_limit_bytes=VMEM_LIMIT_BYTES),
        cost_estimate=cost,
    )(x_flat, x_flat, w0, mean0, rstd0, g0, b0, w2t, masks)


# ----------------------------------------------------------------------------
# Kernel C: tiled elementwise InstanceNorm(affine) + exact GELU on conv_2's raw output
# (needs the full-volume stats, so it is a second sweep over the same lane-dense tiles).
# ----------------------------------------------------------------------------
def _norm_gelu(u, mean, rstd, g, b, *, Ts):
    N, Cout, S = u.shape
    nT = S // Ts

    def kernel(u_ref, m_ref, r_ref, g_ref, b_ref, o_ref):
        y = (u_ref[0] - m_ref[0]) * r_ref[0] * g_ref[...] + b_ref[...]
        o_ref[0] = 0.5 * y * (1.0 + lax.erf(y * INV_SQRT2))

    return pl.pallas_call(
        kernel,
        out_shape=jax.ShapeDtypeStruct((N, Cout, S), jnp.float32),
        grid=(N, nT),
        in_specs=[
            pl.BlockSpec((1, Cout, Ts), lambda n, t: (n, 0, t)),
            pl.BlockSpec((1, Cout, 1), lambda n, t: (n, 0, 0)),
            pl.BlockSpec((1, Cout, 1), lambda n, t: (n, 0, 0)),
            pl.BlockSpec((Cout, 1), lambda n, t: (0, 0)),
            pl.BlockSpec((Cout, 1), lambda n, t: (0, 0)),
        ],
        out_specs=pl.BlockSpec((1, Cout, Ts), lambda n, t: (n, 0, t)),
        compiler_params=pltpu.CompilerParams(
            dimension_semantics=("parallel", "parallel"),
            vmem_limit_bytes=VMEM_LIMIT_BYTES),
    )(u, mean, rstd, g, b)


# ----------------------------------------------------------------------------
# MVCSBlock forward
# ----------------------------------------------------------------------------
def mvcs_block_forward(x, params, atten=False, td=None):
    """x: (N, Cin, D, H, W) float32 (NCDHW, matching PyTorch)."""
    N, Cin, D, H, W = x.shape
    HW = H * W
    S = D * HW
    Cout = params["w0"].shape[0]

    if atten:
        # TODO(synk): SADA_Attention (atten=True) feeds 5-D tensors to nn.MultiheadAttention,
        # which raises a shape error inside PyTorch itself; no runnable semantics to port.
        raise NotImplementedError("atten=True branch is not runnable in the reference module")

    if td is None:
        td = _choose_td(D, HW, Cin, Cout)
    if D % td != 0 or not (td == D or (td * HW) % 128 == 0):
        raise ValueError(f"invalid depth tile td={td} for D={D}, H*W={HW}")
    Ts = td * HW

    x_flat = x.reshape(N, Cin, S).astype(jnp.float32)
    w0 = params["w0"].astype(jnp.float32)

    # Stage A: full-volume InstanceNorm stats of conv_0's raw output (streamed, one pass).
    mean0, rstd0 = _conv0_stats(x_flat, w0, Ts=Ts)

    # Stage B: fused conv_0 (IN+GELU) + 3x3x3 conv_2 + streaming stats of its raw output.
    w2t = jnp.transpose(params["w2"], (2, 3, 4, 0, 1)).reshape(27, Cout, Cout)
    masks = _make_hw_masks(td, H, W)
    u, mean2, rstd2 = _fused_conv0_conv2(
        x_flat, w0, mean0, rstd0, params["g0"], params["b0"], w2t, masks,
        D=D, H=H, W=W, td=td)

    # Stage C: second-stage InstanceNorm(affine) + GELU, tiled / lane-dense.
    out = _norm_gelu(u, mean2, rstd2, params["g2"], params["b2"], Ts=Ts)
    return out.reshape(N, Cout, D, H, W)


# ----------------------------------------------------------------------------
# Pure-JAX reference (numerical self-check)
# ----------------------------------------------------------------------------
def _ref_in_gelu(y, g, b):
    mean = y.mean(axis=(2, 3, 4), keepdims=True)
    var = jnp.square(y - mean).mean(axis=(2, 3, 4), keepdims=True)
    yn = (y - mean) / jnp.sqrt(var + EPS)
    yn = yn * g.reshape(1, -1, 1, 1, 1) + b.reshape(1, -1, 1, 1, 1)
    return 0.5 * yn * (1.0 + lax.erf(yn * INV_SQRT2))


def ref_forward(x, params):
    y = jnp.einsum("oc,ncdhw->nodhw", params["w0"], x)
    y = _ref_in_gelu(y, params["g0"], params["b0"])
    y = lax.conv_general_dilated(
        y, params["w2"], window_strides=(1, 1, 1), padding=[(1, 1)] * 3,
        dimension_numbers=("NCDHW", "OIDHW", "NCDHW"))
    return _ref_in_gelu(y, params["g2"], params["b2"])


# ----------------------------------------------------------------------------
if __name__ == "__main__":
    # Small shapes consistent with the module: batch=2, Cin=4, Cout=8, D=4, H=8, W=8.
    N, Cin, Cout, D, H, W = 2, 4, 8, 4, 8, 8

    key = jax.random.PRNGKey(0)
    kx, k0, k1, k2, k3, k4, k5 = jax.random.split(key, 7)
    x = jax.random.normal(kx, (N, Cin, D, H, W), jnp.float32)

    params = {
        # Conv3d(Cin, Cout, k=1, bias=False) weight -> (Cout, Cin)
        "w0": 0.2 * jax.random.normal(k0, (Cout, Cin), jnp.float32),
        "g0": 1.0 + 0.1 * jax.random.normal(k1, (Cout, 1), jnp.float32),
        "b0": 0.1 * jax.random.normal(k2, (Cout, 1), jnp.float32),
        # Conv3d(Cout, Cout, k=3, pad=1, bias=False) weight -> (Cout, Cout, 3, 3, 3)
        "w2": 0.05 * jax.random.normal(k3, (Cout, Cout, 3, 3, 3), jnp.float32),
        "g2": 1.0 + 0.1 * jax.random.normal(k4, (Cout, 1), jnp.float32),
        "b2": 0.1 * jax.random.normal(k5, (Cout, 1), jnp.float32),
    }

    # Default tiling (auto-chosen: single depth tile at this tiny size).
    out = jax.jit(lambda xx: mvcs_block_forward(xx, params, atten=False))(x)
    out = jax.block_until_ready(out)

    # Forced multi-tile run (td=2 -> 2 depth tiles) to exercise the carried lower halo,
    # the minimal upper-halo DMA, and the streaming InstanceNorm accumulators.
    out_tiled = jax.jit(lambda xx: mvcs_block_forward(xx, params, atten=False, td=2))(x)
    out_tiled = jax.block_until_ready(out_tiled)

    ref = jax.block_until_ready(ref_forward(x, params))
    assert out.shape == (N, Cout, D, H, W)
    assert out_tiled.shape == (N, Cout, D, H, W)
    for o in (out, out_tiled):
        assert jnp.all(jnp.isfinite(o))
        err = float(jnp.max(jnp.abs(o - ref)))
        assert jnp.allclose(o, ref, rtol=2e-3, atol=2e-3), err

    print("KERNEL_OK")
</pallas_src>

<mosaic_0001>
module attributes {stable_mosaic.version = 11 : i64} {
  func.func @kernel(%arg0: i32, %arg1: i32, %arg2: memref<1x4x256xf32, #tpu.memory_space<vmem>>, %arg3: memref<8x4xf32, #tpu.memory_space<vmem>>, %arg4: memref<1x8x1xf32, #tpu.memory_space<vmem>>, %arg5: memref<1x8x1xf32, #tpu.memory_space<vmem>>, %arg6: memref<8x1xf32, #tpu.memory_space<vmem>>, %arg7: memref<8x1xf32, #tpu.memory_space<vmem>>) attributes {dimension_semantics = [#tpu.dimension_semantics<parallel>, #tpu.dimension_semantics<arbitrary>], iteration_bounds = array<i64: 2, 1>, scalar_prefetch = 0 : i64, scratch_operands = 2 : i64, tpu.core_type = #tpu.core_type<tc>, window_params = [{transform_indices = @transform_0, window_bounds = array<i64: 1, 4, 256>}, {pipeline_mode = #tpu.pipeline_mode<synchronous>, transform_indices = @transform_1, window_bounds = array<i64: 8, 4>}, {transform_indices = @transform_2, window_bounds = array<i64: 1, 8, 1>}, {transform_indices = @transform_3, window_bounds = array<i64: 1, 8, 1>}]} {
    %c0_i32 = arith.constant 0 : i32
    %0 = arith.cmpi eq, %arg1, %c0_i32 : i32
    %1 = arith.extui %0 : i1 to i32
    %c0_i32_0 = arith.constant 0 : i32
    %2 = arith.cmpi ne, %1, %c0_i32_0 : i32
    scf.if %2 {
      %cst_17 = arith.constant 0.000000e+00 : f32
      %21 = vector.broadcast %cst_17 : f32 to vector<8x1xf32>
      %c0_18 = arith.constant 0 : index
      %c0_19 = arith.constant 0 : index
      %22 = vector.load %arg6[%c0_18, %c0_19] : memref<8x1xf32, #tpu.memory_space<vmem>>, vector<8x1xf32>
      tpu.vector_store %arg6[%c0_18, %c0_19], %21 {strides = array<i32>} : memref<8x1xf32, #tpu.memory_space<vmem>>, vector<8x1xf32>,
      %cst_20 = arith.constant 0.000000e+00 : f32
      %23 = vector.broadcast %cst_20 : f32 to vector<8x1xf32>
      %c0_21 = arith.constant 0 : index
      %c0_22 = arith.constant 0 : index
      %24 = vector.load %arg7[%c0_21, %c0_22] : memref<8x1xf32, #tpu.memory_space<vmem>>, vector<8x1xf32>
      tpu.vector_store %arg7[%c0_21, %c0_22], %23 {strides = array<i32>} : memref<8x1xf32, #tpu.memory_space<vmem>>, vector<8x1xf32>,
    } else {
    }
    %c0 = arith.constant 0 : index
    %c0_1 = arith.constant 0 : index
    %3 = vector.load %arg3[%c0, %c0_1] : memref<8x4xf32, #tpu.memory_space<vmem>>, vector<8x4xf32>
    %c0_2 = arith.constant 0 : index
    %c0_3 = arith.constant 0 : index
    %c0_4 = arith.constant 0 : index
    %4 = vector.load %arg2[%c0_2, %c0_3, %c0_4] : memref<1x4x256xf32, #tpu.memory_space<vmem>>, vector<1x4x256xf32>
    %5 = vector.shape_cast %4 : vector<1x4x256xf32> to vector<4x256xf32>
    %cst = arith.constant dense<0.000000e+00> : vector<8x256xf32>
    %6 = tpu.matmul %3, %5, %cst {dimension_numbers = #tpu.dot_dimension_numbers<[1], [0], [0], [1], [0, 0, 1, 1], [], []>} : vector<8x4xf32>, vector<4x256xf32>, vector<8x256xf32> -> vector<8x256xf32>
    %c0_5 = arith.constant 0 : index
    %c0_6 = arith.constant 0 : index
    %7 = vector.load %arg6[%c0_5, %c0_6] : memref<8x1xf32, #tpu.memory_space<vmem>>, vector<8x1xf32>
    %cst_7 = arith.constant dense<0.000000e+00> : vector<8xf32>
    %8 = vector.multi_reduction <add>, %6, %cst_7 [1] : vector<8x256xf32> to vector<8xf32>
    %9 = vector.shape_cast %8 : vector<8xf32> to vector<8x1xf32>
    %10 = arith.addf %7, %9 : vector<8x1xf32>
    %c0_8 = arith.constant 0 : index
    %c0_9 = arith.constant 0 : index
    %11 = vector.load %arg6[%c0_8, %c0_9] : memref<8x1xf32, #tpu.memory_space<vmem>>, vector<8x1xf32>
    tpu.vector_store %arg6[%c0_8, %c0_9], %10 {strides = array<i32>} : memref<8x1xf32, #tpu.memory_space<vmem>>, vector<8x1xf32>,
    %c0_10 = arith.constant 0 : index
    %c0_11 = arith.constant 0 : index
    %12 = vector.load %arg7[%c0_10, %c0_11] : memref<8x1xf32, #tpu.memory_space<vmem>>, vector<8x1xf32>
    %13 = arith.mulf %6, %6 : vector<8x256xf32>
    %cst_12 = arith.constant dense<0.000000e+00> : vector<8xf32>
    %14 = vector.multi_reduction <add>, %13, %cst_12 [1] : vector<8x256xf32> to vector<8xf32>
    %15 = vector.shape_cast %14 : vector<8xf32> to vector<8x1xf32>
    %16 = arith.addf %12, %15 : vector<8x1xf32>
    %c0_13 = arith.constant 0 : index
    %c0_14 = arith.constant 0 : index
    %17 = vector.load %arg7[%c0_13, %c0_14] : memref<8x1xf32, #tpu.memory_space<vmem>>, vector<8x1xf32>
    tpu.vector_store %arg7[%c0_13, %c0_14], %16 {strides = array<i32>} : memref<8x1xf32, #tpu.memory_space<vmem>>, vector<8x1xf32>,
    %c0_i32_15 = arith.constant 0 : i32
    %18 = arith.cmpi eq, %arg1, %c0_i32_15 : i32
    %19 = arith.extui %18 : i1 to i32
    %c0_i32_16 = arith.constant 0 : i32
    %20 = arith.cmpi ne, %19, %c0_i32_16 : i32
    scf.if %20 {
      %c0_17 = arith.constant 0 : index
      %c0_18 = arith.constant 0 : index
      %21 = vector.load %arg6[%c0_17, %c0_18] : memref<8x1xf32, #tpu.memory_space<vmem>>, vector<8x1xf32>
      %cst_19 = arith.constant 3.906250e-03 : f32
      %22 = vector.broadcast %cst_19 : f32 to vector<8x1xf32>
      %23 = arith.mulf %21, %22 : vector<8x1xf32>
      %c0_20 = arith.constant 0 : index
      %c0_21 = arith.constant 0 : index
      %24 = vector.load %arg7[%c0_20, %c0_21] : memref<8x1xf32, #tpu.memory_space<vmem>>, vector<8x1xf32>
      %cst_22 = arith.constant 3.906250e-03 : f32
      %25 = vector.broadcast %cst_22 : f32 to vector<8x1xf32>
      %26 = arith.mulf %24, %25 : vector<8x1xf32>
      %27 = arith.mulf %23, %23 : vector<8x1xf32>
      %28 = arith.subf %26, %27 : vector<8x1xf32>
      %c0_23 = arith.constant 0 : index
      %c0_24 = arith.constant 0 : index
      %c0_25 = arith.constant 0 : index
      %29 = vector.load %arg4[%c0_23, %c0_24, %c0_25] : memref<1x8x1xf32, #tpu.memory_space<vmem>>, vector<1x8x1xf32>
      %30 = vector.shape_cast %29 : vector<1x8x1xf32> to vector<8x1xf32>
      %31 = vector.shape_cast %23 : vector<8x1xf32> to vector<1x8x1xf32>
      tpu.vector_store %arg4[%c0_23, %c0_24, %c0_25], %31 {strides = array<i32>} : memref<1x8x1xf32, #tpu.memory_space<vmem>>, vector<1x8x1xf32>,
      %cst_26 = arith.constant 0.000000e+00 : f32
      %32 = vector.broadcast %cst_26 : f32 to vector<8x1xf32>
      %33 = arith.maximumf %28, %32 : vector<8x1xf32>
      %cst_27 = arith.constant 9.99999974E-6 : f32
      %34 = vector.broadcast %cst_27 : f32 to vector<8x1xf32>
      %35 = arith.addf %33, %34 : vector<8x1xf32>
      %36 = math.rsqrt %35 : vector<8x1xf32>
      %c0_28 = arith.constant 0 : index
      %c0_29 = arith.constant 0 : index
      %c0_30 = arith.constant 0 : index
      %37 = vector.load %arg5[%c0_28, %c0_29, %c0_30] : memref<1x8x1xf32, #tpu.memory_space<vmem>>, vector<1x8x1xf32>
      %38 = vector.shape_cast %37 : vector<1x8x1xf32> to vector<8x1xf32>
      %39 = vector.shape_cast %36 : vector<8x1xf32> to vector<1x8x1xf32>
      tpu.vector_store %arg5[%c0_28, %c0_29, %c0_30], %39 {strides = array<i32>} : memref<1x8x1xf32, #tpu.memory_space<vmem>>, vector<1x8x1xf32>,
    } else {
    }
    return
  }
  func.func @transform_0(%arg0: i32, %arg1: i32) -> (i32, i32, i32) {
    %c0_i32 = arith.constant 0 : i32
    %c0_i32_0 = arith.constant 0 : i32
    return %arg0, %c0_i32, %arg1 : i32, i32, i32
  }
  func.func @transform_1(%arg0: i32, %arg1: i32) -> (i32, i32) {
    %c0_i32 = arith.constant 0 : i32
    %c0_i32_0 = arith.constant 0 : i32
    %c0_i32_1 = arith.constant 0 : i32
    return %c0_i32, %c0_i32_0 : i32, i32
  }
  func.func @transform_2(%arg0: i32, %arg1: i32) -> (i32, i32, i32) {
    %c0_i32 = arith.constant 0 : i32
    %c0_i32_0 = arith.constant 0 : i32
    %c0_i32_1 = arith.constant 0 : i32
    return %arg0, %c0_i32, %c0_i32_0 : i32, i32, i32
  }
  func.func @transform_3(%arg0: i32, %arg1: i32) -> (i32, i32, i32) {
    %c0_i32 = arith.constant 0 : i32
    %c0_i32_0 = arith.constant 0 : i32
    %c0_i32_1 = arith.constant 0 : i32
    return %arg0, %c0_i32, %c0_i32_0 : i32, i32, i32
  }
}

module attributes {stable_mosaic.version = 11 : i64} {
  func.func @kernel(%arg0: i32, %arg1: i32, %arg2: memref<1x8x256xf32, #tpu.memory_space<vmem>>, %arg3: memref<1x8x1xf32, #tpu.memory_space<vmem>>, %arg4: memref<1x8x1xf32, #tpu.memory_space<vmem>>, %arg5: memref<8x1xf32, #tpu.memory_space<vmem>>, %arg6: memref<8x1xf32, #tpu.memory_space<vmem>>, %arg7: memref<1x8x256xf32, #tpu.memory_space<vmem>>) attributes {dimension_semantics = [#tpu.dimension_semantics<parallel>, #tpu.dimension_semantics<parallel>], iteration_bounds = array<i64: 2, 1>, scalar_prefetch = 0 : i64, scratch_operands = 0 : i64, tpu.core_type = #tpu.core_type<tc>, window_params = [{transform_indices = @transform_0, window_bounds = array<i64: 1, 8, 256>}, {transform_indices = @transform_1, window_bounds = array<i64: 1, 8, 1>}, {transform_indices = @transform_2, window_bounds = array<i64: 1, 8, 1>}, {pipeline_mode = #tpu.pipeline_mode<synchronous>, transform_indices = @transform_3, window_bounds = array<i64: 8, 1>}, {pipeline_mode = #tpu.pipeline_mode<synchronous>, transform_indices = @transform_4, window_bounds = array<i64: 8, 1>}, {transform_indices = @transform_5, window_bounds = array<i64: 1, 8, 256>}]} {
    %c0 = arith.constant 0 : index
    %c0_0 = arith.constant 0 : index
    %c0_1 = arith.constant 0 : index
    %0 = vector.load %arg2[%c0, %c0_0, %c0_1] : memref<1x8x256xf32, #tpu.memory_space<vmem>>, vector<1x8x256xf32>
    %1 = vector.shape_cast %0 : vector<1x8x256xf32> to vector<8x256xf32>
    %c0_2 = arith.constant 0 : index
    %c0_3 = arith.constant 0 : index
    %c0_4 = arith.constant 0 : index
    %2 = vector.load %arg3[%c0_2, %c0_3, %c0_4] : memref<1x8x1xf32, #tpu.memory_space<vmem>>, vector<1x8x1xf32>
    %3 = vector.shape_cast %2 : vector<1x8x1xf32> to vector<8x1xf32>
    %4 = vector.broadcast %3 : vector<8x1xf32> to vector<8x256xf32>
    %5 = arith.subf %1, %4 : vector<8x256xf32>
    %c0_5 = arith.constant 0 : index
    %c0_6 = arith.constant 0 : index
    %c0_7 = arith.constant 0 : index
    %6 = vector.load %arg4[%c0_5, %c0_6, %c0_7] : memref<1x8x1xf32, #tpu.memory_space<vmem>>, vector<1x8x1xf32>
    %7 = vector.shape_cast %6 : vector<1x8x1xf32> to vector<8x1xf32>
    %8 = vector.broadcast %7 : vector<8x1xf32> to vector<8x256xf32>
    %9 = arith.mulf %5, %8 : vector<8x256xf32>
    %c0_8 = arith.constant 0 : index
    %c0_9 = arith.constant 0 : index
    %10 = vector.load %arg5[%c0_8, %c0_9] : memref<8x1xf32, #tpu.memory_space<vmem>>, vector<8x1xf32>
    %11 = vector.broadcast %10 : vector<8x1xf32> to vector<8x256xf32>
    %12 = arith.mulf %9, %11 : vector<8x256xf32>
    %c0_10 = arith.constant 0 : index
    %c0_11 = arith.constant 0 : index
    %13 = vector.load %arg6[%c0_10, %c0_11] : memref<8x1xf32, #tpu.memory_space<vmem>>, vector<8x1xf32>
    %14 = vector.broadcast %13 : vector<8x1xf32> to vector<8x256xf32>
    %15 = arith.addf %12, %14 : vector<8x256xf32>
    %cst = arith.constant 5.000000e-01 : f32
    %16 = vector.broadcast %cst : f32 to vector<8x256xf32>
    %17 = arith.mulf %16, %15 : vector<8x256xf32>
    %cst_12 = arith.constant 0.707106769 : f32
    %18 = vector.broadcast %cst_12 : f32 to vector<8x256xf32>
    %19 = arith.mulf %15, %18 : vector<8x256xf32>
    %20 = math.erf %19 : vector<8x256xf32>
    %cst_13 = arith.constant 1.000000e+00 : f32
    %21 = vector.broadcast %cst_13 : f32 to vector<8x256xf32>
    %22 = arith.addf %21, %20 : vector<8x256xf32>
    %23 = arith.mulf %17, %22 : vector<8x256xf32>
    %c0_14 = arith.constant 0 : index
    %c0_15 = arith.constant 0 : index
    %c0_16 = arith.constant 0 : index
    %24 = vector.load %arg7[%c0_14, %c0_15, %c0_16] : memref<1x8x256xf32, #tpu.memory_space<vmem>>, vector<1x8x256xf32>
    %25 = vector.shape_cast %24 : vector<1x8x256xf32> to vector<8x256xf32>
    %26 = vector.shape_cast %23 : vector<8x256xf32> to vector<1x8x256xf32>
    tpu.vector_store %arg7[%c0_14, %c0_15, %c0_16], %26 {strides = array<i32>} : memref<1x8x256xf32, #tpu.memory_space<vmem>>, vector<1x8x256xf32>,
    return
  }
  func.func @transform_0(%arg0: i32, %arg1: i32) -> (i32, i32, i32) {
    %c0_i32 = arith.constant 0 : i32
    %c0_i32_0 = arith.constant 0 : i32
    return %arg0, %c0_i32, %arg1 : i32, i32, i32
  }
  func.func @transform_1(%arg0: i32, %arg1: i32) -> (i32, i32, i32) {
    %c0_i32 = arith.constant 0 : i32
    %c0_i32_0 = arith.constant 0 : i32
    %c0_i32_1 = arith.constant 0 : i32
    return %arg0, %c0_i32, %c0_i32_0 : i32, i32, i32
  }
  func.func @transform_2(%arg0: i32, %arg1: i32) -> (i32, i32, i32) {
    %c0_i32 = arith.constant 0 : i32
    %c0_i32_0 = arith.constant 0 : i32
    %c0_i32_1 = arith.constant 0 : i32
    return %arg0, %c0_i32, %c0_i32_0 : i32, i32, i32
  }
  func.func @transform_3(%arg0: i32, %arg1: i32) -> (i32, i32) {
    %c0_i32 = arith.constant 0 : i32
    %c0_i32_0 = arith.constant 0 : i32
    %c0_i32_1 = arith.constant 0 : i32
    return %c0_i32, %c0_i32_0 : i32, i32
  }
  func.func @transform_4(%arg0: i32, %arg1: i32) -> (i32, i32) {
    %c0_i32 = arith.constant 0 : i32
    %c0_i32_0 = arith.constant 0 : i32
    %c0_i32_1 = arith.constant 0 : i32
    return %c0_i32, %c0_i32_0 : i32, i32
  }
  func.func @transform_5(%arg0: i32, %arg1: i32) -> (i32, i32, i32) {
    %c0_i32 = arith.constant 0 : i32
    %c0_i32_0 = arith.constant 0 : i32
    return %arg0, %c0_i32, %arg1 : i32, i32, i32
  }
}

module attributes {stable_mosaic.version = 11 : i64} {
  func.func @kernel(%arg0: i32, %arg1: i32, %arg2: memref<1x4x256xf32, #tpu.memory_space<vmem>>, %arg3: memref<1x4x128xf32, #tpu.memory_space<vmem>>, %arg4: memref<8x4xf32, #tpu.memory_space<vmem>>, %arg5: memref<1x8x1xf32, #tpu.memory_space<vmem>>, %arg6: memref<1x8x1xf32, #tpu.memory_space<vmem>>, %arg7: memref<8x1xf32, #tpu.memory_space<vmem>>, %arg8: memref<8x1xf32, #tpu.memory_space<vmem>>, %arg9: memref<27x8x8xf32, #tpu.memory_space<vmem>>, %arg10: memref<9x256xf32, #tpu.memory_space<vmem>>, %arg11: memref<1x8x256xf32, #tpu.memory_space<vmem>>, %arg12: memref<1x8x1xf32, #tpu.memory_space<vmem>>, %arg13: memref<1x8x1xf32, #tpu.memory_space<vmem>>, %arg14: memref<8x402xf32, #tpu.memory_space<vmem>>, %arg15: memref<8x64xf32, #tpu.memory_space<vmem>>, %arg16: memref<8x1xf32, #tpu.memory_space<vmem>>, %arg17: memref<8x1xf32, #tpu.memory_space<vmem>>) attributes {dimension_semantics = [#tpu.dimension_semantics<parallel>, #tpu.dimension_semantics<arbitrary>], iteration_bounds = array<i64: 2, 1>, scalar_prefetch = 0 : i64, scratch_operands = 4 : i64, tpu.core_type = #tpu.core_type<tc>, window_params = [{transform_indices = @transform_0, window_bounds = array<i64: 1, 4, 256>}, {transform_indices = @transform_1, window_bounds = array<i64: 1, 4, 128>}, {pipeline_mode = #tpu.pipeline_mode<synchronous>, transform_indices = @transform_2, window_bounds = array<i64: 8, 4>}, {transform_indices = @transform_3, window_bounds = array<i64: 1, 8, 1>}, {transform_indices = @transform_4, window_bounds = array<i64: 1, 8, 1>}, {pipeline_mode = #tpu.pipeline_mode<synchronous>, transform_indices = @transform_5, window_bounds = array<i64: 8, 1>}, {pipeline_mode = #tpu.pipeline_mode<synchronous>, transform_indices = @transform_6, window_bounds = array<i64: 8, 1>}, {pipeline_mode = #tpu.pipeline_mode<synchronous>, transform_indices = @transform_7, window_bounds = array<i64: 27, 8, 8>}, {pipeline_mode = #tpu.pipeline_mode<synchronous>, transform_indices = @transform_8, window_bounds = array<i64: 9, 256>}, {transform_indices = @transform_9, window_bounds = array<i64: 1, 8, 256>}, {transform_indices = @transform_10, window_bounds = array<i64: 1, 8, 1>}, {transform_indices = @transform_11, window_bounds = array<i64: 1, 8, 1>}]} {
    %c0_i32 = arith.constant 0 : i32
    %0 = arith.cmpi eq, %arg1, %c0_i32 : i32
    %1 = arith.extui %0 : i1 to i32
    %c0_i32_0 = arith.constant 0 : i32
    %2 = arith.cmpi ne, %1, %c0_i32_0 : i32
    scf.if %2 {
      %cst_217 = arith.constant 0.000000e+00 : f32
      %285 = vector.broadcast %cst_217 : f32 to vector<8x402xf32>
      %c0_218 = arith.constant 0 : index
      %c0_219 = arith.constant 0 : index
      %286 = vector.load %arg14[%c0_218, %c0_219] : memref<8x402xf32, #tpu.memory_space<vmem>>, vector<8x402xf32>
      tpu.vector_store %arg14[%c0_218, %c0_219], %285 {strides = array<i32>} : memref<8x402xf32, #tpu.memory_space<vmem>>, vector<8x402xf32>,
      %cst_220 = arith.constant 0.000000e+00 : f32
      %287 = vector.broadcast %cst_220 : f32 to vector<8x64xf32>
      %c0_221 = arith.constant 0 : index
      %c0_222 = arith.constant 0 : index
      %288 = vector.load %arg15[%c0_221, %c0_222] : memref<8x64xf32, #tpu.memory_space<vmem>>, vector<8x64xf32>
      tpu.vector_store %arg15[%c0_221, %c0_222], %287 {strides = array<i32>} : memref<8x64xf32, #tpu.memory_space<vmem>>, vector<8x64xf32>,
      %cst_223 = arith.constant 0.000000e+00 : f32
      %289 = vector.broadcast %cst_223 : f32 to vector<8x1xf32>
      %c0_224 = arith.constant 0 : index
      %c0_225 = arith.constant 0 : index
      %290 = vector.load %arg16[%c0_224, %c0_225] : memref<8x1xf32, #tpu.memory_space<vmem>>, vector<8x1xf32>
      tpu.vector_store %arg16[%c0_224, %c0_225], %289 {strides = array<i32>} : memref<8x1xf32, #tpu.memory_space<vmem>>, vector<8x1xf32>,
      %cst_226 = arith.constant 0.000000e+00 : f32
      %291 = vector.broadcast %cst_226 : f32 to vector<8x1xf32>
      %c0_227 = arith.constant 0 : index
      %c0_228 = arith.constant 0 : index
      %292 = vector.load %arg17[%c0_227, %c0_228] : memref<8x1xf32, #tpu.memory_space<vmem>>, vector<8x1xf32>
      tpu.vector_store %arg17[%c0_227, %c0_228], %291 {strides = array<i32>} : memref<8x1xf32, #tpu.memory_space<vmem>>, vector<8x1xf32>,
    } else {
    }
    %c0 = arith.constant 0 : index
    %c0_1 = arith.constant 0 : index
    %3 = vector.load %arg4[%c0, %c0_1] : memref<8x4xf32, #tpu.memory_space<vmem>>, vector<8x4xf32>
    %c0_2 = arith.constant 0 : index
    %c0_3 = arith.constant 0 : index
    %c0_4 = arith.constant 0 : index
    %4 = vector.load %arg5[%c0_2, %c0_3, %c0_4] : memref<1x8x1xf32, #tpu.memory_space<vmem>>, vector<1x8x1xf32>
    %5 = vector.shape_cast %4 : vector<1x8x1xf32> to vector<8x1xf32>
    %c0_5 = arith.constant 0 : index
    %c0_6 = arith.constant 0 : index
    %c0_7 = arith.constant 0 : index
    %6 = vector.load %arg6[%c0_5, %c0_6, %c0_7] : memref<1x8x1xf32, #tpu.memory_space<vmem>>, vector<1x8x1xf32>
    %7 = vector.shape_cast %6 : vector<1x8x1xf32> to vector<8x1xf32>
    %c0_8 = arith.constant 0 : index
    %c0_9 = arith.constant 0 : index
    %8 = vector.load %arg7[%c0_8, %c0_9] : memref<8x1xf32, #tpu.memory_space<vmem>>, vector<8x1xf32>
    %c0_10 = arith.constant 0 : index
    %c0_11 = arith.constant 0 : index
    %9 = vector.load %arg8[%c0_10, %c0_11] : memref<8x1xf32, #tpu.memory_space<vmem>>, vector<8x1xf32>
    %c0_12 = arith.constant 0 : index
    %c0_13 = arith.constant 0 : index
    %c0_14 = arith.constant 0 : index
    %10 = vector.load %arg2[%c0_12, %c0_13, %c0_14] : memref<1x4x256xf32, #tpu.memory_space<vmem>>, vector<1x4x256xf32>
    %11 = vector.shape_cast %10 : vector<1x4x256xf32> to vector<4x256xf32>
    %cst = arith.constant dense<0.000000e+00> : vector<8x256xf32>
    %12 = tpu.matmul %3, %11, %cst {dimension_numbers = #tpu.dot_dimension_numbers<[1], [0], [0], [1], [0, 0, 1, 1], [], []>} : vector<8x4xf32>, vector<4x256xf32>, vector<8x256xf32> -> vector<8x256xf32>
    %13 = vector.broadcast %5 : vector<8x1xf32> to vector<8x256xf32>
    %14 = arith.subf %12, %13 : vector<8x256xf32>
    %15 = vector.broadcast %7 : vector<8x1xf32> to vector<8x256xf32>
    %16 = arith.mulf %14, %15 : vector<8x256xf32>
    %17 = vector.broadcast %8 : vector<8x1xf32> to vector<8x256xf32>
    %18 = arith.mulf %16, %17 : vector<8x256xf32>
    %19 = vector.broadcast %9 : vector<8x1xf32> to vector<8x256xf32>
    %20 = arith.addf %18, %19 : vector<8x256xf32>
    %cst_15 = arith.constant 5.000000e-01 : f32
    %21 = vector.broadcast %cst_15 : f32 to vector<8x256xf32>
    %22 = arith.mulf %21, %20 : vector<8x256xf32>
    %cst_16 = arith.constant 0.707106769 : f32
    %23 = vector.broadcast %cst_16 : f32 to vector<8x256xf32>
    %24 = arith.mulf %20, %23 : vector<8x256xf32>
    %25 = math.erf %24 : vector<8x256xf32>
    %cst_17 = arith.constant 1.000000e+00 : f32
    %26 = vector.broadcast %cst_17 : f32 to vector<8x256xf32>
    %27 = arith.addf %26, %25 : vector<8x256xf32>
    %28 = arith.mulf %22, %27 : vector<8x256xf32>
    %c0_18 = arith.constant 0 : index
    %c0_19 = arith.constant 0 : index
    %c0_20 = arith.constant 0 : index
    %29 = vector.load %arg3[%c0_18, %c0_19, %c0_20] : memref<1x4x128xf32, #tpu.memory_space<vmem>>, vector<1x4x128xf32>
    %30 = vector.shape_cast %29 : vector<1x4x128xf32> to vector<4x128xf32>
    %31 = vector.extract_strided_slice %30 {offsets = [0, 0], sizes = [4, 64], strides = [1, 1]} : vector<4x128xf32> to vector<4x64xf32>
    %cst_21 = arith.constant dense<0.000000e+00> : vector<8x64xf32>
    %32 = tpu.matmul %3, %31, %cst_21 {dimension_numbers = #tpu.dot_dimension_numbers<[1], [0], [0], [1], [0, 0, 1, 1], [], []>} : vector<8x4xf32>, vector<4x64xf32>, vector<8x64xf32> -> vector<8x64xf32>
    %33 = vector.broadcast %5 : vector<8x1xf32> to vector<8x64xf32>
    %34 = arith.subf %32, %33 : vector<8x64xf32>
    %35 = vector.broadcast %7 : vector<8x1xf32> to vector<8x64xf32>
    %36 = arith.mulf %34, %35 : vector<8x64xf32>
    %37 = vector.broadcast %8 : vector<8x1xf32> to vector<8x64xf32>
    %38 = arith.mulf %36, %37 : vector<8x64xf32>
    %39 = vector.broadcast %9 : vector<8x1xf32> to vector<8x64xf32>
    %40 = arith.addf %38, %39 : vector<8x64xf32>
    %cst_22 = arith.constant 5.000000e-01 : f32
    %41 = vector.broadcast %cst_22 : f32 to vector<8x64xf32>
    %42 = arith.mulf %41, %40 : vector<8x64xf32>
    %cst_23 = arith.constant 0.707106769 : f32
    %43 = vector.broadcast %cst_23 : f32 to vector<8x64xf32>
    %44 = arith.mulf %40, %43 : vector<8x64xf32>
    %45 = math.erf %44 : vector<8x64xf32>
    %cst_24 = arith.constant 1.000000e+00 : f32
    %46 = vector.broadcast %cst_24 : f32 to vector<8x64xf32>
    %47 = arith.addf %46, %45 : vector<8x64xf32>
    %48 = arith.mulf %42, %47 : vector<8x64xf32>
    %c0_i32_25 = arith.constant 0 : i32
    %49 = arith.cmpi slt, %arg1, %c0_i32_25 : i32
    %50 = arith.extui %49 : i1 to i32
    %51 = arith.sitofp %50 : i32 to f32
    %52 = vector.broadcast %51 : f32 to vector<8x64xf32>
    %53 = arith.mulf %48, %52 : vector<8x64xf32>
    %c0_26 = arith.constant 0 : index
    %c0_27 = arith.constant 0 : index
    %54 = vector.load %arg15[%c0_26, %c0_27] : memref<8x64xf32, #tpu.memory_space<vmem>>, vector<8x64xf32>
    %c0_28 = arith.constant 0 : index
    %c9 = arith.constant 9 : index
    %55 = vector.load %arg14[%c0_28, %c9] : memref<8x402xf32, #tpu.memory_space<vmem>>, vector<8x64xf32>
    tpu.vector_store %arg14[%c0_28, %c9], %54 {strides = array<i32>} : memref<8x402xf32, #tpu.memory_space<vmem>>, vector<8x64xf32>,
    %c0_29 = arith.constant 0 : index
    %c73 = arith.constant 73 : index
    %56 = vector.load %arg14[%c0_29, %c73] : memref<8x402xf32, #tpu.memory_space<vmem>>, vector<8x256xf32>
    tpu.vector_store %arg14[%c0_29, %c73], %28 {strides = array<i32>} : memref<8x402xf32, #tpu.memory_space<vmem>>, vector<8x256xf32>,
    %c0_30 = arith.constant 0 : index
    %c329 = arith.constant 329 : index
    %57 = vector.load %arg14[%c0_30, %c329] : memref<8x402xf32, #tpu.memory_space<vmem>>, vector<8x64xf32>
    tpu.vector_store %arg14[%c0_30, %c329], %53 {strides = array<i32>} : memref<8x402xf32, #tpu.memory_space<vmem>>, vector<8x64xf32>,
    %cst_31 = arith.constant 0.000000e+00 : f32
    %58 = vector.broadcast %cst_31 : f32 to vector<8x256xf32>
    %c0_32 = arith.constant 0 : index
    %c0_33 = arith.constant 0 : index
    %59 = vector.load %arg14[%c0_32, %c0_33] : memref<8x402xf32, #tpu.memory_space<vmem>>, vector<8x256xf32>
    %c0_34 = arith.constant 0 : index
    %c0_35 = arith.constant 0 : index
    %60 = vector.load %arg10[%c0_34, %c0_35] : memref<9x256xf32, #tpu.memory_space<vmem>>, vector<1x256xf32>
    %61 = vector.broadcast %60 : vector<1x256xf32> to vector<8x256xf32>
    %62 = arith.mulf %59, %61 : vector<8x256xf32>
    %c0_36 = arith.constant 0 : index
    %c0_37 = arith.constant 0 : index
    %c0_38 = arith.constant 0 : index
    %63 = vector.load %arg9[%c0_36, %c0_37, %c0_38] : memref<27x8x8xf32, #tpu.memory_space<vmem>>, vector<1x8x8xf32>
    %64 = vector.shape_cast %63 : vector<1x8x8xf32> to vector<8x8xf32>
    %cst_39 = arith.constant dense<0.000000e+00> : vector<8x256xf32>
    %65 = tpu.matmul %64, %62, %cst_39 {dimension_numbers = #tpu.dot_dimension_numbers<[1], [0], [0], [1], [0, 0, 1, 1], [], []>} : vector<8x8xf32>, vector<8x256xf32>, vector<8x256xf32> -> vector<8x256xf32>
    %66 = arith.addf %58, %65 : vector<8x256xf32>
    %c0_40 = arith.constant 0 : index
    %c1 = arith.constant 1 : index
    %67 = vector.load %arg14[%c0_40, %c1] : memref<8x402xf32, #tpu.memory_space<vmem>>, vector<8x256xf32>
    %c1_41 = arith.constant 1 : index
    %c0_42 = arith.constant 0 : index
    %68 = vector.load %arg10[%c1_41, %c0_42] : memref<9x256xf32, #tpu.memory_space<vmem>>, vector<1x256xf32>
    %69 = vector.broadcast %68 : vector<1x256xf32> to vector<8x256xf32>
    %70 = arith.mulf %67, %69 : vector<8x256xf32>
    %c1_43 = arith.constant 1 : index
    %c0_44 = arith.constant 0 : index
    %c0_45 = arith.constant 0 : index
    %71 = vector.load %arg9[%c1_43, %c0_44, %c0_45] : memref<27x8x8xf32, #tpu.memory_space<vmem>>, vector<1x8x8xf32>
    %72 = vector.shape_cast %71 : vector<1x8x8xf32> to vector<8x8xf32>
    %cst_46 = arith.constant dense<0.000000e+00> : vector<8x256xf32>
    %73 = tpu.matmul %72, %70, %cst_46 {dimension_numbers = #tpu.dot_dimension_numbers<[1], [0], [0], [1], [0, 0, 1, 1], [], []>} : vector<8x8xf32>, vector<8x256xf32>, vector<8x256xf32> -> vector<8x256xf32>
    %74 = arith.addf %66, %73 : vector<8x256xf32>
    %c0_47 = arith.constant 0 : index
    %c2 = arith.constant 2 : index
    %75 = vector.load %arg14[%c0_47, %c2] : memref<8x402xf32, #tpu.memory_space<vmem>>, vector<8x256xf32>
    %c2_48 = arith.constant 2 : index
    %c0_49 = arith.constant 0 : index
    %76 = vector.load %arg10[%c2_48, %c0_49] : memref<9x256xf32, #tpu.memory_space<vmem>>, vector<1x256xf32>
    %77 = vector.broadcast %76 : vector<1x256xf32> to vector<8x256xf32>
    %78 = arith.mulf %75, %77 : vector<8x256xf32>
    %c2_50 = arith.constant 2 : index
    %c0_51 = arith.constant 0 : index
    %c0_52 = arith.constant 0 : index
    %79 = vector.load %arg9[%c2_50, %c0_51, %c0_52] : memref<27x8x8xf32, #tpu.memory_space<vmem>>, vector<1x8x8xf32>
    %80 = vector.shape_cast %79 : vector<1x8x8xf32> to vector<8x8xf32>
    %cst_53 = arith.constant dense<0.000000e+00> : vector<8x256xf32>
    %81 = tpu.matmul %80, %78, %cst_53 {dimension_numbers = #tpu.dot_dimension_numbers<[1], [0], [0], [1], [0, 0, 1, 1], [], []>} : vector<8x8xf32>, vector<8x256xf32>, vector<8x256xf32> -> vector<8x256xf32>
    %82 = arith.addf %74, %81 : vector<8x256xf32>
    %c0_54 = arith.constant 0 : index
    %c8 = arith.constant 8 : index
    %83 = vector.load %arg14[%c0_54, %c8] : memref<8x402xf32, #tpu.memory_space<vmem>>, vector<8x256xf32>
    %c3 = arith.constant 3 : index
    %c0_55 = arith.constant 0 : index
    %84 = vector.load %arg10[%c3, %c0_55] : memref<9x256xf32, #tpu.memory_space<vmem>>, vector<1x256xf32>
    %85 = vector.broadcast %84 : vector<1x256xf32> to vector<8x256xf32>
    %86 = arith.mulf %83, %85 : vector<8x256xf32>
    %c3_56 = arith.constant 3 : index
    %c0_57 = arith.constant 0 : index
    %c0_58 = arith.constant 0 : index
    %87 = vector.load %arg9[%c3_56, %c0_57, %c0_58] : memref<27x8x8xf32, #tpu.memory_space<vmem>>, vector<1x8x8xf32>
    %88 = vector.shape_cast %87 : vector<1x8x8xf32> to vector<8x8xf32>
    %cst_59 = arith.constant dense<0.000000e+00> : vector<8x256xf32>
    %89 = tpu.matmul %88, %86, %cst_59 {dimension_numbers = #tpu.dot_dimension_numbers<[1], [0], [0], [1], [0, 0, 1, 1], [], []>} : vector<8x8xf32>, vector<8x256xf32>, vector<8x256xf32> -> vector<8x256xf32>
    %90 = arith.addf %82, %89 : vector<8x256xf32>
    %c0_60 = arith.constant 0 : index
    %c9_61 = arith.constant 9 : index
    %91 = vector.load %arg14[%c0_60, %c9_61] : memref<8x402xf32, #tpu.memory_space<vmem>>, vector<8x256xf32>
    %c4 = arith.constant 4 : index
    %c0_62 = arith.constant 0 : index
    %c0_63 = arith.constant 0 : index
    %92 = vector.load %arg9[%c4, %c0_62, %c0_63] : memref<27x8x8xf32, #tpu.memory_space<vmem>>, vector<1x8x8xf32>
    %93 = vector.shape_cast %92 : vector<1x8x8xf32> to vector<8x8xf32>
    %cst_64 = arith.constant dense<0.000000e+00> : vector<8x256xf32>
    %94 = tpu.matmul %93, %91, %cst_64 {dimension_numbers = #tpu.dot_dimension_numbers<[1], [0], [0], [1], [0, 0, 1, 1], [], []>} : vector<8x8xf32>, vector<8x256xf32>, vector<8x256xf32> -> vector<8x256xf32>
    %95 = arith.addf %90, %94 : vector<8x256xf32>
    %c0_65 = arith.constant 0 : index
    %c10 = arith.constant 10 : index
    %96 = vector.load %arg14[%c0_65, %c10] : memref<8x402xf32, #tpu.memory_space<vmem>>, vector<8x256xf32>
    %c5 = arith.constant 5 : index
    %c0_66 = arith.constant 0 : index
    %97 = vector.load %arg10[%c5, %c0_66] : memref<9x256xf32, #tpu.memory_space<vmem>>, vector<1x256xf32>
    %98 = vector.broadcast %97 : vector<1x256xf32> to vector<8x256xf32>
    %99 = arith.mulf %96, %98 : vector<8x256xf32>
    %c5_67 = arith.constant 5 : index
    %c0_68 = arith.constant 0 : index
    %c0_69 = arith.constant 0 : index
    %100 = vector.load %arg9[%c5_67, %c0_68, %c0_69] : memref<27x8x8xf32, #tpu.memory_space<vmem>>, vector<1x8x8xf32>
    %101 = vector.shape_cast %100 : vector<1x8x8xf32> to vector<8x8xf32>
    %cst_70 = arith.constant dense<0.000000e+00> : vector<8x256xf32>
    %102 = tpu.matmul %101, %99, %cst_70 {dimension_numbers = #tpu.dot_dimension_numbers<[1], [0], [0], [1], [0, 0, 1, 1], [], []>} : vector<8x8xf32>, vector<8x256xf32>, vector<8x256xf32> -> vector<8x256xf32>
    %103 = arith.addf %95, %102 : vector<8x256xf32>
    %c0_71 = arith.constant 0 : index
    %c16 = arith.constant 16 : index
    %104 = vector.load %arg14[%c0_71, %c16] : memref<8x402xf32, #tpu.memory_space<vmem>>, vector<8x256xf32>
    %c6 = arith.constant 6 : index
    %c0_72 = arith.constant 0 : index
    %105 = vector.load %arg10[%c6, %c0_72] : memref<9x256xf32, #tpu.memory_space<vmem>>, vector<1x256xf32>
    %106 = vector.broadcast %105 : vector<1x256xf32> to vector<8x256xf32>
    %107 = arith.mulf %104, %106 : vector<8x256xf32>
    %c6_73 = arith.constant 6 : index
    %c0_74 = arith.constant 0 : index
    %c0_75 = arith.constant 0 : index
    %108 = vector.load %arg9[%c6_73, %c0_74, %c0_75] : memref<27x8x8xf32, #tpu.memory_space<vmem>>, vector<1x8x8xf32>
    %109 = vector.shape_cast %108 : vector<1x8x8xf32> to vector<8x8xf32>
    %cst_76 = arith.constant dense<0.000000e+00> : vector<8x256xf32>
    %110 = tpu.matmul %109, %107, %cst_76 {dimension_numbers = #tpu.dot_dimension_numbers<[1], [0], [0], [1], [0, 0, 1, 1], [], []>} : vector<8x8xf32>, vector<8x256xf32>, vector<8x256xf32> -> vector<8x256xf32>
    %111 = arith.addf %103, %110 : vector<8x256xf32>
    %c0_77 = arith.constant 0 : index
    %c17 = arith.constant 17 : index
    %112 = vector.load %arg14[%c0_77, %c17] : memref<8x402xf32, #tpu.memory_space<vmem>>, vector<8x256xf32>
    %c7 = arith.constant 7 : index
    %c0_78 = arith.constant 0 : index
    %113 = vector.load %arg10[%c7, %c0_78] : memref<9x256xf32, #tpu.memory_space<vmem>>, vector<1x256xf32>
    %114 = vector.broadcast %113 : vector<1x256xf32> to vector<8x256xf32>
    %115 = arith.mulf %112, %114 : vector<8x256xf32>
    %c7_79 = arith.constant 7 : index
    %c0_80 = arith.constant 0 : index
    %c0_81 = arith.constant 0 : index
    %116 = vector.load %arg9[%c7_79, %c0_80, %c0_81] : memref<27x8x8xf32, #tpu.memory_space<vmem>>, vector<1x8x8xf32>
    %117 = vector.shape_cast %116 : vector<1x8x8xf32> to vector<8x8xf32>
    %cst_82 = arith.constant dense<0.000000e+00> : vector<8x256xf32>
    %118 = tpu.matmul %117, %115, %cst_82 {dimension_numbers = #tpu.dot_dimension_numbers<[1], [0], [0], [1], [0, 0, 1, 1], [], []>} : vector<8x8xf32>, vector<8x256xf32>, vector<8x256xf32> -> vector<8x256xf32>
    %119 = arith.addf %111, %118 : vector<8x256xf32>
    %c0_83 = arith.constant 0 : index
    %c18 = arith.constant 18 : index
    %120 = vector.load %arg14[%c0_83, %c18] : memref<8x402xf32, #tpu.memory_space<vmem>>, vector<8x256xf32>
    %c8_84 = arith.constant 8 : index
    %c0_85 = arith.constant 0 : index
    %121 = vector.load %arg10[%c8_84, %c0_85] : memref<9x256xf32, #tpu.memory_space<vmem>>, vector<1x256xf32>
    %122 = vector.broadcast %121 : vector<1x256xf32> to vector<8x256xf32>
    %123 = arith.mulf %120, %122 : vector<8x256xf32>
    %c8_86 = arith.constant 8 : index
    %c0_87 = arith.constant 0 : index
    %c0_88 = arith.constant 0 : index
    %124 = vector.load %arg9[%c8_86, %c0_87, %c0_88] : memref<27x8x8xf32, #tpu.memory_space<vmem>>, vector<1x8x8xf32>
    %125 = vector.shape_cast %124 : vector<1x8x8xf32> to vector<8x8xf32>
    %cst_89 = arith.constant dense<0.000000e+00> : vector<8x256xf32>
    %126 = tpu.matmul %125, %123, %cst_89 {dimension_numbers = #tpu.dot_dimension_numbers<[1], [0], [0], [1], [0, 0, 1, 1], [], []>} : vector<8x8xf32>, vector<8x256xf32>, vector<8x256xf32> -> vector<8x256xf32>
    %127 = arith.addf %119, %126 : vector<8x256xf32>
    %c0_90 = arith.constant 0 : index
    %c64 = arith.constant 64 : index
    %128 = vector.load %arg14[%c0_90, %c64] : memref<8x402xf32, #tpu.memory_space<vmem>>, vector<8x256xf32>
    %c0_91 = arith.constant 0 : index
    %c0_92 = arith.constant 0 : index
    %129 = vector.load %arg10[%c0_91, %c0_92] : memref<9x256xf32, #tpu.memory_space<vmem>>, vector<1x256xf32>
    %130 = vector.broadcast %129 : vector<1x256xf32> to vector<8x256xf32>
    %131 = arith.mulf %128, %130 : vector<8x256xf32>
    %c9_93 = arith.constant 9 : index
    %c0_94 = arith.constant 0 : index
    %c0_95 = arith.constant 0 : index
    %132 = vector.load %arg9[%c9_93, %c0_94, %c0_95] : memref<27x8x8xf32, #tpu.memory_space<vmem>>, vector<1x8x8xf32>
    %133 = vector.shape_cast %132 : vector<1x8x8xf32> to vector<8x8xf32>
    %cst_96 = arith.constant dense<0.000000e+00> : vector<8x256xf32>
    %134 = tpu.matmul %133, %131, %cst_96 {dimension_numbers = #tpu.dot_dimension_numbers<[1], [0], [0], [1], [0, 0, 1, 1], [], []>} : vector<8x8xf32>, vector<8x256xf32>, vector<8x256xf32> -> vector<8x256xf32>
    %135 = arith.addf %127, %134 : vector<8x256xf32>
    %c0_97 = arith.constant 0 : index
    %c65 = arith.constant 65 : index
    %136 = vector.load %arg14[%c0_97, %c65] : memref<8x402xf32, #tpu.memory_space<vmem>>, vector<8x256xf32>
    %c1_98 = arith.constant 1 : index
    %c0_99 = arith.constant 0 : index
    %137 = vector.load %arg10[%c1_98, %c0_99] : memref<9x256xf32, #tpu.memory_space<vmem>>, vector<1x256xf32>
    %138 = vector.broadcast %137 : vector<1x256xf32> to vector<8x256xf32>
    %139 = arith.mulf %136, %138 : vector<8x256xf32>
    %c10_100 = arith.constant 10 : index
    %c0_101 = arith.constant 0 : index
    %c0_102 = arith.constant 0 : index
    %140 = vector.load %arg9[%c10_100, %c0_101, %c0_102] : memref<27x8x8xf32, #tpu.memory_space<vmem>>, vector<1x8x8xf32>
    %141 = vector.shape_cast %140 : vector<1x8x8xf32> to vector<8x8xf32>
    %cst_103 = arith.constant dense<0.000000e+00> : vector<8x256xf32>
    %142 = tpu.matmul %141, %139, %cst_103 {dimension_numbers = #tpu.dot_dimension_numbers<[1], [0], [0], [1], [0, 0, 1, 1], [], []>} : vector<8x8xf32>, vector<8x256xf32>, vector<8x256xf32> -> vector<8x256xf32>
    %143 = arith.addf %135, %142 : vector<8x256xf32>
    %c0_104 = arith.constant 0 : index
    %c66 = arith.constant 66 : index
    %144 = vector.load %arg14[%c0_104, %c66] : memref<8x402xf32, #tpu.memory_space<vmem>>, vector<8x256xf32>
    %c2_105 = arith.constant 2 : index
    %c0_106 = arith.constant 0 : index
    %145 = vector.load %arg10[%c2_105, %c0_106] : memref<9x256xf32, #tpu.memory_space<vmem>>, vector<1x256xf32>
    %146 = vector.broadcast %145 : vector<1x256xf32> to vector<8x256xf32>
    %147 = arith.mulf %144, %146 : vector<8x256xf32>
    %c11 = arith.constant 11 : index
    %c0_107 = arith.constant 0 : index
    %c0_108 = arith.constant 0 : index
    %148 = vector.load %arg9[%c11, %c0_107, %c0_108] : memref<27x8x8xf32, #tpu.memory_space<vmem>>, vector<1x8x8xf32>
    %149 = vector.shape_cast %148 : vector<1x8x8xf32> to vector<8x8xf32>
    %cst_109 = arith.constant dense<0.000000e+00> : vector<8x256xf32>
    %150 = tpu.matmul %149, %147, %cst_109 {dimension_numbers = #tpu.dot_dimension_numbers<[1], [0], [0], [1], [0, 0, 1, 1], [], []>} : vector<8x8xf32>, vector<8x256xf32>, vector<8x256xf32> -> vector<8x256xf32>
    %151 = arith.addf %143, %150 : vector<8x256xf32>
    %c0_110 = arith.constant 0 : index
    %c72 = arith.constant 72 : index
    %152 = vector.load %arg14[%c0_110, %c72] : memref<8x402xf32, #tpu.memory_space<vmem>>, vector<8x256xf32>
    %c3_111 = arith.constant 3 : index
    %c0_112 = arith.constant 0 : index
    %153 = vector.load %arg10[%c3_111, %c0_112] : memref<9x256xf32, #tpu.memory_space<vmem>>, vector<1x256xf32>
    %154 = vector.broadcast %153 : vector<1x256xf32> to vector<8x256xf32>
    %155 = arith.mulf %152, %154 : vector<8x256xf32>
    %c12 = arith.constant 12 : index
    %c0_113 = arith.constant 0 : index
    %c0_114 = arith.constant 0 : index
    %156 = vector.load %arg9[%c12, %c0_113, %c0_114] : memref<27x8x8xf32, #tpu.memory_space<vmem>>, vector<1x8x8xf32>
    %157 = vector.shape_cast %156 : vector<1x8x8xf32> to vector<8x8xf32>
    %cst_115 = arith.constant dense<0.000000e+00> : vector<8x256xf32>
    %158 = tpu.matmul %157, %155, %cst_115 {dimension_numbers = #tpu.dot_dimension_numbers<[1], [0], [0], [1], [0, 0, 1, 1], [], []>} : vector<8x8xf32>, vector<8x256xf32>, vector<8x256xf32> -> vector<8x256xf32>
    %159 = arith.addf %151, %158 : vector<8x256xf32>
    %c0_116 = arith.constant 0 : index
    %c73_117 = arith.constant 73 : index
    %160 = vector.load %arg14[%c0_116, %c73_117] : memref<8x402xf32, #tpu.memory_space<vmem>>, vector<8x256xf32>
    %c13 = arith.constant 13 : index
    %c0_118 = arith.constant 0 : index
    %c0_119 = arith.constant 0 : index
    %161 = vector.load %arg9[%c13, %c0_118, %c0_119] : memref<27x8x8xf32, #tpu.memory_space<vmem>>, vector<1x8x8xf32>
    %162 = vector.shape_cast %161 : vector<1x8x8xf32> to vector<8x8xf32>
    %cst_120 = arith.constant dense<0.000000e+00> : vector<8x256xf32>
    %163 = tpu.matmul %162, %160, %cst_120 {dimension_numbers = #tpu.dot_dimension_numbers<[1], [0], [0], [1], [0, 0, 1, 1], [], []>} : vector<8x8xf32>, vector<8x256xf32>, vector<8x256xf32> -> vector<8x256xf32>
    %164 = arith.addf %159, %163 : vector<8x256xf32>
    %c0_121 = arith.constant 0 : index
    %c74 = arith.constant 74 : index
    %165 = vector.load %arg14[%c0_121, %c74] : memref<8x402xf32, #tpu.memory_space<vmem>>, vector<8x256xf32>
    %c5_122 = arith.constant 5 : index
    %c0_123 = arith.constant 0 : index
    %166 = vector.load %arg10[%c5_122, %c0_123] : memref<9x256xf32, #tpu.memory_space<vmem>>, vector<1x256xf32>
    %167 = vector.broadcast %166 : vector<1x256xf32> to vector<8x256xf32>
    %168 = arith.mulf %165, %167 : vector<8x256xf32>
    %c14 = arith.constant 14 : index
    %c0_124 = arith.constant 0 : index
    %c0_125 = arith.constant 0 : index
    %169 = vector.load %arg9[%c14, %c0_124, %c0_125] : memref<27x8x8xf32, #tpu.memory_space<vmem>>, vector<1x8x8xf32>
    %170 = vector.shape_cast %169 : vector<1x8x8xf32> to vector<8x8xf32>
    %cst_126 = arith.constant dense<0.000000e+00> : vector<8x256xf32>
    %171 = tpu.matmul %170, %168, %cst_126 {dimension_numbers = #tpu.dot_dimension_numbers<[1], [0], [0], [1], [0, 0, 1, 1], [], []>} : vector<8x8xf32>, vector<8x256xf32>, vector<8x256xf32> -> vector<8x256xf32>
    %172 = arith.addf %164, %171 : vector<8x256xf32>
    %c0_127 = arith.constant 0 : index
    %c80 = arith.constant 80 : index
    %173 = vector.load %arg14[%c0_127, %c80] : memref<8x402xf32, #tpu.memory_space<vmem>>, vector<8x256xf32>
    %c6_128 = arith.constant 6 : index
    %c0_129 = arith.constant 0 : index
    %174 = vector.load %arg10[%c6_128, %c0_129] : memref<9x256xf32, #tpu.memory_space<vmem>>, vector<1x256xf32>
    %175 = vector.broadcast %174 : vector<1x256xf32> to vector<8x256xf32>
    %176 = arith.mulf %173, %175 : vector<8x256xf32>
    %c15 = arith.constant 15 : index
    %c0_130 = arith.constant 0 : index
    %c0_131 = arith.constant 0 : index
    %177 = vector.load %arg9[%c15, %c0_130, %c0_131] : memref<27x8x8xf32, #tpu.memory_space<vmem>>, vector<1x8x8xf32>
    %178 = vector.shape_cast %177 : vector<1x8x8xf32> to vector<8x8xf32>
    %cst_132 = arith.constant dense<0.000000e+00> : vector<8x256xf32>
    %179 = tpu.matmul %178, %176, %cst_132 {dimension_numbers = #tpu.dot_dimension_numbers<[1], [0], [0], [1], [0, 0, 1, 1], [], []>} : vector<8x8xf32>, vector<8x256xf32>, vector<8x256xf32> -> vector<8x256xf32>
    %180 = arith.addf %172, %179 : vector<8x256xf32>
    %c0_133 = arith.constant 0 : index
    %c81 = arith.constant 81 : index
    %181 = vector.load %arg14[%c0_133, %c81] : memref<8x402xf32, #tpu.memory_space<vmem>>, vector<8x256xf32>
    %c7_134 = arith.constant 7 : index
    %c0_135 = arith.constant 0 : index
    %182 = vector.load %arg10[%c7_134, %c0_135] : memref<9x256xf32, #tpu.memory_space<vmem>>, vector<1x256xf32>
    %183 = vector.broadcast %182 : vector<1x256xf32> to vector<8x256xf32>
    %184 = arith.mulf %181, %183 : vector<8x256xf32>
    %c16_136 = arith.constant 16 : index
    %c0_137 = arith.constant 0 : index
    %c0_138 = arith.constant 0 : index
    %185 = vector.load %arg9[%c16_136, %c0_137, %c0_138] : memref<27x8x8xf32, #tpu.memory_space<vmem>>, vector<1x8x8xf32>
    %186 = vector.shape_cast %185 : vector<1x8x8xf32> to vector<8x8xf32>
    %cst_139 = arith.constant dense<0.000000e+00> : vector<8x256xf32>
    %187 = tpu.matmul %186, %184, %cst_139 {dimension_numbers = #tpu.dot_dimension_numbers<[1], [0], [0], [1], [0, 0, 1, 1], [], []>} : vector<8x8xf32>, vector<8x256xf32>, vector<8x256xf32> -> vector<8x256xf32>
    %188 = arith.addf %180, %187 : vector<8x256xf32>
    %c0_140 = arith.constant 0 : index
    %c82 = arith.constant 82 : index
    %189 = vector.load %arg14[%c0_140, %c82] : memref<8x402xf32, #tpu.memory_space<vmem>>, vector<8x256xf32>
    %c8_141 = arith.constant 8 : index
    %c0_142 = arith.constant 0 : index
    %190 = vector.load %arg10[%c8_141, %c0_142] : memref<9x256xf32, #tpu.memory_space<vmem>>, vector<1x256xf32>
    %191 = vector.broadcast %190 : vector<1x256xf32> to vector<8x256xf32>
    %192 = arith.mulf %189, %191 : vector<8x256xf32>
    %c17_143 = arith.constant 17 : index
    %c0_144 = arith.constant 0 : index
    %c0_145 = arith.constant 0 : index
    %193 = vector.load %arg9[%c17_143, %c0_144, %c0_145] : memref<27x8x8xf32, #tpu.memory_space<vmem>>, vector<1x8x8xf32>
    %194 = vector.shape_cast %193 : vector<1x8x8xf32> to vector<8x8xf32>
    %cst_146 = arith.constant dense<0.000000e+00> : vector<8x256xf32>
    %195 = tpu.matmul %194, %192, %cst_146 {dimension_numbers = #tpu.dot_dimension_numbers<[1], [0], [0], [1], [0, 0, 1, 1], [], []>} : vector<8x8xf32>, vector<8x256xf32>, vector<8x256xf32> -> vector<8x256xf32>
    %196 = arith.addf %188, %195 : vector<8x256xf32>
    %c0_147 = arith.constant 0 : index
    %c128 = arith.constant 128 : index
    %197 = vector.load %arg14[%c0_147, %c128] : memref<8x402xf32, #tpu.memory_space<vmem>>, vector<8x256xf32>
    %c0_148 = arith.constant 0 : index
    %c0_149 = arith.constant 0 : index
    %198 = vector.load %arg10[%c0_148, %c0_149] : memref<9x256xf32, #tpu.memory_space<vmem>>, vector<1x256xf32>
    %199 = vector.broadcast %198 : vector<1x256xf32> to vector<8x256xf32>
    %200 = arith.mulf %197, %199 : vector<8x256xf32>
    %c18_150 = arith.constant 18 : index
    %c0_151 = arith.constant 0 : index
    %c0_152 = arith.constant 0 : index
    %201 = vector.load %arg9[%c18_150, %c0_151, %c0_152] : memref<27x8x8xf32, #tpu.memory_space<vmem>>, vector<1x8x8xf32>
    %202 = vector.shape_cast %201 : vector<1x8x8xf32> to vector<8x8xf32>
    %cst_153 = arith.constant dense<0.000000e+00> : vector<8x256xf32>
    %203 = tpu.matmul %202, %200, %cst_153 {dimension_numbers = #tpu.dot_dimension_numbers<[1], [0], [0], [1], [0, 0, 1, 1], [], []>} : vector<8x8xf32>, vector<8x256xf32>, vector<8x256xf32> -> vector<8x256xf32>
    %204 = arith.addf %196, %203 : vector<8x256xf32>
    %c0_154 = arith.constant 0 : index
    %c129 = arith.constant 129 : index
    %205 = vector.load %arg14[%c0_154, %c129] : memref<8x402xf32, #tpu.memory_space<vmem>>, vector<8x256xf32>
    %c1_155 = arith.constant 1 : index
    %c0_156 = arith.constant 0 : index
    %206 = vector.load %arg10[%c1_155, %c0_156] : memref<9x256xf32, #tpu.memory_space<vmem>>, vector<1x256xf32>
    %207 = vector.broadcast %206 : vector<1x256xf32> to vector<8x256xf32>
    %208 = arith.mulf %205, %207 : vector<8x256xf32>
    %c19 = arith.constant 19 : index
    %c0_157 = arith.constant 0 : index
    %c0_158 = arith.constant 0 : index
    %209 = vector.load %arg9[%c19, %c0_157, %c0_158] : memref<27x8x8xf32, #tpu.memory_space<vmem>>, vector<1x8x8xf32>
    %210 = vector.shape_cast %209 : vector<1x8x8xf32> to vector<8x8xf32>
    %cst_159 = arith.constant dense<0.000000e+00> : vector<8x256xf32>
    %211 = tpu.matmul %210, %208, %cst_159 {dimension_numbers = #tpu.dot_dimension_numbers<[1], [0], [0], [1], [0, 0, 1, 1], [], []>} : vector<8x8xf32>, vector<8x256xf32>, vector<8x256xf32> -> vector<8x256xf32>
    %212 = arith.addf %204, %211 : vector<8x256xf32>
    %c0_160 = arith.constant 0 : index
    %c130 = arith.constant 130 : index
    %213 = vector.load %arg14[%c0_160, %c130] : memref<8x402xf32, #tpu.memory_space<vmem>>, vector<8x256xf32>
    %c2_161 = arith.constant 2 : index
    %c0_162 = arith.constant 0 : index
    %214 = vector.load %arg10[%c2_161, %c0_162] : memref<9x256xf32, #tpu.memory_space<vmem>>, vector<1x256xf32>
    %215 = vector.broadcast %214 : vector<1x256xf32> to vector<8x256xf32>
    %216 = arith.mulf %213, %215 : vector<8x256xf32>
    %c20 = arith.constant 20 : index
    %c0_163 = arith.constant 0 : index
    %c0_164 = arith.constant 0 : index
    %217 = vector.load %arg9[%c20, %c0_163, %c0_164] : memref<27x8x8xf32, #tpu.memory_space<vmem>>, vector<1x8x8xf32>
    %218 = vector.shape_cast %217 : vector<1x8x8xf32> to vector<8x8xf32>
    %cst_165 = arith.constant dense<0.000000e+00> : vector<8x256xf32>
    %219 = tpu.matmul %218, %216, %cst_165 {dimension_numbers = #tpu.dot_dimension_numbers<[1], [0], [0], [1], [0, 0, 1, 1], [], []>} : vector<8x8xf32>, vector<8x256xf32>, vector<8x256xf32> -> vector<8x256xf32>
    %220 = arith.addf %212, %219 : vector<8x256xf32>
    %c0_166 = arith.constant 0 : index
    %c136 = arith.constant 136 : index
    %221 = vector.load %arg14[%c0_166, %c136] : memref<8x402xf32, #tpu.memory_space<vmem>>, vector<8x256xf32>
    %c3_167 = arith.constant 3 : index
    %c0_168 = arith.constant 0 : index
    %222 = vector.load %arg10[%c3_167, %c0_168] : memref<9x256xf32, #tpu.memory_space<vmem>>, vector<1x256xf32>
    %223 = vector.broadcast %222 : vector<1x256xf32> to vector<8x256xf32>
    %224 = arith.mulf %221, %223 : vector<8x256xf32>
    %c21 = arith.constant 21 : index
    %c0_169 = arith.constant 0 : index
    %c0_170 = arith.constant 0 : index
    %225 = vector.load %arg9[%c21, %c0_169, %c0_170] : memref<27x8x8xf32, #tpu.memory_space<vmem>>, vector<1x8x8xf32>
    %226 = vector.shape_cast %225 : vector<1x8x8xf32> to vector<8x8xf32>
    %cst_171 = arith.constant dense<0.000000e+00> : vector<8x256xf32>
    %227 = tpu.matmul %226, %224, %cst_171 {dimension_numbers = #tpu.dot_dimension_numbers<[1], [0], [0], [1], [0, 0, 1, 1], [], []>} : vector<8x8xf32>, vector<8x256xf32>, vector<8x256xf32> -> vector<8x256xf32>
    %228 = arith.addf %220, %227 : vector<8x256xf32>
    %c0_172 = arith.constant 0 : index
    %c137 = arith.constant 137 : index
    %229 = vector.load %arg14[%c0_172, %c137] : memref<8x402xf32, #tpu.memory_space<vmem>>, vector<8x256xf32>
    %c22 = arith.constant 22 : index
    %c0_173 = arith.constant 0 : index
    %c0_174 = arith.constant 0 : index
    %230 = vector.load %arg9[%c22, %c0_173, %c0_174] : memref<27x8x8xf32, #tpu.memory_space<vmem>>, vector<1x8x8xf32>
    %231 = vector.shape_cast %230 : vector<1x8x8xf32> to vector<8x8xf32>
    %cst_175 = arith.constant dense<0.000000e+00> : vector<8x256xf32>
    %232 = tpu.matmul %231, %229, %cst_175 {dimension_numbers = #tpu.dot_dimension_numbers<[1], [0], [0], [1], [0, 0, 1, 1], [], []>} : vector<8x8xf32>, vector<8x256xf32>, vector<8x256xf32> -> vector<8x256xf32>
    %233 = arith.addf %228, %232 : vector<8x256xf32>
    %c0_176 = arith.constant 0 : index
    %c138 = arith.constant 138 : index
    %234 = vector.load %arg14[%c0_176, %c138] : memref<8x402xf32, #tpu.memory_space<vmem>>, vector<8x256xf32>
    %c5_177 = arith.constant 5 : index
    %c0_178 = arith.constant 0 : index
    %235 = vector.load %arg10[%c5_177, %c0_178] : memref<9x256xf32, #tpu.memory_space<vmem>>, vector<1x256xf32>
    %236 = vector.broadcast %235 : vector<1x256xf32> to vector<8x256xf32>
    %237 = arith.mulf %234, %236 : vector<8x256xf32>
    %c23 = arith.constant 23 : index
    %c0_179 = arith.constant 0 : index
    %c0_180 = arith.constant 0 : index
    %238 = vector.load %arg9[%c23, %c0_179, %c0_180] : memref<27x8x8xf32, #tpu.memory_space<vmem>>, vector<1x8x8xf32>
    %239 = vector.shape_cast %238 : vector<1x8x8xf32> to vector<8x8xf32>
    %cst_181 = arith.constant dense<0.000000e+00> : vector<8x256xf32>
    %240 = tpu.matmul %239, %237, %cst_181 {dimension_numbers = #tpu.dot_dimension_numbers<[1], [0], [0], [1], [0, 0, 1, 1], [], []>} : vector<8x8xf32>, vector<8x256xf32>, vector<8x256xf32> -> vector<8x256xf32>
    %241 = arith.addf %233, %240 : vector<8x256xf32>
    %c0_182 = arith.constant 0 : index
    %c144 = arith.constant 144 : index
    %242 = vector.load %arg14[%c0_182, %c144] : memref<8x402xf32, #tpu.memory_space<vmem>>, vector<8x256xf32>
    %c6_183 = arith.constant 6 : index
    %c0_184 = arith.constant 0 : index
    %243 = vector.load %arg10[%c6_183, %c0_184] : memref<9x256xf32, #tpu.memory_space<vmem>>, vector<1x256xf32>
    %244 = vector.broadcast %243 : vector<1x256xf32> to vector<8x256xf32>
    %245 = arith.mulf %242, %244 : vector<8x256xf32>
    %c24 = arith.constant 24 : index
    %c0_185 = arith.constant 0 : index
    %c0_186 = arith.constant 0 : index
    %246 = vector.load %arg9[%c24, %c0_185, %c0_186] : memref<27x8x8xf32, #tpu.memory_space<vmem>>, vector<1x8x8xf32>
    %247 = vector.shape_cast %246 : vector<1x8x8xf32> to vector<8x8xf32>
    %cst_187 = arith.constant dense<0.000000e+00> : vector<8x256xf32>
    %248 = tpu.matmul %247, %245, %cst_187 {dimension_numbers = #tpu.dot_dimension_numbers<[1], [0], [0], [1], [0, 0, 1, 1], [], []>} : vector<8x8xf32>, vector<8x256xf32>, vector<8x256xf32> -> vector<8x256xf32>
    %249 = arith.addf %241, %248 : vector<8x256xf32>
    %c0_188 = arith.constant 0 : index
    %c145 = arith.constant 145 : index
    %250 = vector.load %arg14[%c0_188, %c145] : memref<8x402xf32, #tpu.memory_space<vmem>>, vector<8x256xf32>
    %c7_189 = arith.constant 7 : index
    %c0_190 = arith.constant 0 : index
    %251 = vector.load %arg10[%c7_189, %c0_190] : memref<9x256xf32, #tpu.memory_space<vmem>>, vector<1x256xf32>
    %252 = vector.broadcast %251 : vector<1x256xf32> to vector<8x256xf32>
    %253 = arith.mulf %250, %252 : vector<8x256xf32>
    %c25 = arith.constant 25 : index
    %c0_191 = arith.constant 0 : index
    %c0_192 = arith.constant 0 : index
    %254 = vector.load %arg9[%c25, %c0_191, %c0_192] : memref<27x8x8xf32, #tpu.memory_space<vmem>>, vector<1x8x8xf32>
    %255 = vector.shape_cast %254 : vector<1x8x8xf32> to vector<8x8xf32>
    %cst_193 = arith.constant dense<0.000000e+00> : vector<8x256xf32>
    %256 = tpu.matmul %255, %253, %cst_193 {dimension_numbers = #tpu.dot_dimension_numbers<[1], [0], [0], [1], [0, 0, 1, 1], [], []>} : vector<8x8xf32>, vector<8x256xf32>, vector<8x256xf32> -> vector<8x256xf32>
    %257 = arith.addf %249, %256 : vector<8x256xf32>
    %c0_194 = arith.constant 0 : index
    %c146 = arith.constant 146 : index
    %258 = vector.load %arg14[%c0_194, %c146] : memref<8x402xf32, #tpu.memory_space<vmem>>, vector<8x256xf32>
    %c8_195 = arith.constant 8 : index
    %c0_196 = arith.constant 0 : index
    %259 = vector.load %arg10[%c8_195, %c0_196] : memref<9x256xf32, #tpu.memory_space<vmem>>, vector<1x256xf32>
    %260 = vector.broadcast %259 : vector<1x256xf32> to vector<8x256xf32>
    %261 = arith.mulf %258, %260 : vector<8x256xf32>
    %c26 = arith.constant 26 : index
    %c0_197 = arith.constant 0 : index
    %c0_198 = arith.constant 0 : index
    %262 = vector.load %arg9[%c26, %c0_197, %c0_198] : memref<27x8x8xf32, #tpu.memory_space<vmem>>, vector<1x8x8xf32>
    %263 = vector.shape_cast %262 : vector<1x8x8xf32> to vector<8x8xf32>
    %cst_199 = arith.constant dense<0.000000e+00> : vector<8x256xf32>
    %264 = tpu.matmul %263, %261, %cst_199 {dimension_numbers = #tpu.dot_dimension_numbers<[1], [0], [0], [1], [0, 0, 1, 1], [], []>} : vector<8x8xf32>, vector<8x256xf32>, vector<8x256xf32> -> vector<8x256xf32>
    %265 = arith.addf %257, %264 : vector<8x256xf32>
    %c0_200 = arith.constant 0 : index
    %c0_201 = arith.constant 0 : index
    %c0_202 = arith.constant 0 : index
    %266 = vector.load %arg11[%c0_200, %c0_201, %c0_202] : memref<1x8x256xf32, #tpu.memory_space<vmem>>, vector<1x8x256xf32>
    %267 = vector.shape_cast %266 : vector<1x8x256xf32> to vector<8x256xf32>
    %268 = vector.shape_cast %265 : vector<8x256xf32> to vector<1x8x256xf32>
    tpu.vector_store %arg11[%c0_200, %c0_201, %c0_202], %268 {strides = array<i32>} : memref<1x8x256xf32, #tpu.memory_space<vmem>>, vector<1x8x256xf32>,
    %c0_203 = arith.constant 0 : index
    %c0_204 = arith.constant 0 : index
    %269 = vector.load %arg16[%c0_203, %c0_204] : memref<8x1xf32, #tpu.memory_space<vmem>>, vector<8x1xf32>
    %cst_205 = arith.constant dense<0.000000e+00> : vector<8xf32>
    %270 = vector.multi_reduction <add>, %265, %cst_205 [1] : vector<8x256xf32> to vector<8xf32>
    %271 = vector.shape_cast %270 : vector<8xf32> to vector<8x1xf32>
    %272 = arith.addf %269, %271 : vector<8x1xf32>
    %c0_206 = arith.constant 0 : index
    %c0_207 = arith.constant 0 : index
    %273 = vector.load %arg16[%c0_206, %c0_207] : memref<8x1xf32, #tpu.memory_space<vmem>>, vector<8x1xf32>
    tpu.vector_store %arg16[%c0_206, %c0_207], %272 {strides = array<i32>} : memref<8x1xf32, #tpu.memory_space<vmem>>, vector<8x1xf32>,
    %c0_208 = arith.constant 0 : index
    %c0_209 = arith.constant 0 : index
    %274 = vector.load %arg17[%c0_208, %c0_209] : memref<8x1xf32, #tpu.memory_space<vmem>>, vector<8x1xf32>
    %275 = arith.mulf %265, %265 : vector<8x256xf32>
    %cst_210 = arith.constant dense<0.000000e+00> : vector<8xf32>
    %276 = vector.multi_reduction <add>, %275, %cst_210 [1] : vector<8x256xf32> to vector<8xf32>
    %277 = vector.shape_cast %276 : vector<8xf32> to vector<8x1xf32>
    %278 = arith.addf %274, %277 : vector<8x1xf32>
    %c0_211 = arith.constant 0 : index
    %c0_212 = arith.constant 0 : index
    %279 = vector.load %arg17[%c0_211, %c0_212] : memref<8x1xf32, #tpu.memory_space<vmem>>, vector<8x1xf32>
    tpu.vector_store %arg17[%c0_211, %c0_212], %278 {strides = array<i32>} : memref<8x1xf32, #tpu.memory_space<vmem>>, vector<8x1xf32>,
    %280 = vector.extract_strided_slice %28 {offsets = [0, 192], sizes = [8, 64], strides = [1, 1]} : vector<8x256xf32> to vector<8x64xf32>
    %c0_213 = arith.constant 0 : index
    %c0_214 = arith.constant 0 : index
    %281 = vector.load %arg15[%c0_213, %c0_214] : memref<8x64xf32, #tpu.memory_space<vmem>>, vector<8x64xf32>
    tpu.vector_store %arg15[%c0_213, %c0_214], %280 {strides = array<i32>} : memref<8x64xf32, #tpu.memory_space<vmem>>, vector<8x64xf32>,
    %c0_i32_215 = arith.constant 0 : i32
    %282 = arith.cmpi eq, %arg1, %c0_i32_215 : i32
    %283 = arith.extui %282 : i1 to i32
    %c0_i32_216 = arith.constant 0 : i32
    %284 = arith.cmpi ne, %283, %c0_i32_216 : i32
    scf.if %284 {
      %c0_217 = arith.constant 0 : index
      %c0_218 = arith.constant 0 : index
      %285 = vector.load %arg16[%c0_217, %c0_218] : memref<8x1xf32, #tpu.memory_space<vmem>>, vector<8x1xf32>
      %cst_219 = arith.constant 3.906250e-03 : f32
      %286 = vector.broadcast %cst_219 : f32 to vector<8x1xf32>
      %287 = arith.mulf %285, %286 : vector<8x1xf32>
      %c0_220 = arith.constant 0 : index
      %c0_221 = arith.constant 0 : index
      %288 = vector.load %arg17[%c0_220, %c0_221] : memref<8x1xf32, #tpu.memory_space<vmem>>, vector<8x1xf32>
      %cst_222 = arith.constant 3.906250e-03 : f32
      %289 = vector.broadcast %cst_222 : f32 to vector<8x1xf32>
      %290 = arith.mulf %288, %289 : vector<8x1xf32>
      %291 = arith.mulf %287, %287 : vector<8x1xf32>
      %292 = arith.subf %290, %291 : vector<8x1xf32>
      %c0_223 = arith.constant 0 : index
      %c0_224 = arith.constant 0 : index
      %c0_225 = arith.constant 0 : index
      %293 = vector.load %arg12[%c0_223, %c0_224, %c0_225] : memref<1x8x1xf32, #tpu.memory_space<vmem>>, vector<1x8x1xf32>
      %294 = vector.shape_cast %293 : vector<1x8x1xf32> to vector<8x1xf32>
      %295 = vector.shape_cast %287 : vector<8x1xf32> to vector<1x8x1xf32>
      tpu.vector_store %arg12[%c0_223, %c0_224, %c0_225], %295 {strides = array<i32>} : memref<1x8x1xf32, #tpu.memory_space<vmem>>, vector<1x8x1xf32>,
      %cst_226 = arith.constant 0.000000e+00 : f32
      %296 = vector.broadcast %cst_226 : f32 to vector<8x1xf32>
      %297 = arith.maximumf %292, %296 : vector<8x1xf32>
      %cst_227 = arith.constant 9.99999974E-6 : f32
      %298 = vector.broadcast %cst_227 : f32 to vector<8x1xf32>
      %299 = arith.addf %297, %298 : vector<8x1xf32>
      %300 = math.rsqrt %299 : vector<8x1xf32>
      %c0_228 = arith.constant 0 : index
      %c0_229 = arith.constant 0 : index
      %c0_230 = arith.constant 0 : index
      %301 = vector.load %arg13[%c0_228, %c0_229, %c0_230] : memref<1x8x1xf32, #tpu.memory_space<vmem>>, vector<1x8x1xf32>
      %302 = vector.shape_cast %301 : vector<1x8x1xf32> to vector<8x1xf32>
      %303 = vector.shape_cast %300 : vector<8x1xf32> to vector<1x8x1xf32>
      tpu.vector_store %arg13[%c0_228, %c0_229, %c0_230], %303 {strides = array<i32>} : memref<1x8x1xf32, #tpu.memory_space<vmem>>, vector<1x8x1xf32>,
    } else {
    }
    return
  }
  func.func @transform_0(%arg0: i32, %arg1: i32) -> (i32, i32, i32) {
    %c0_i32 = arith.constant 0 : i32
    %c0_i32_0 = arith.constant 0 : i32
    return %arg0, %c0_i32, %arg1 : i32, i32, i32
  }
  func.func @transform_1(%arg0: i32, %arg1: i32) -> (i32, i32, i32) {
    %c1_i32 = arith.constant 1 : i32
    %0 = arith.addi %arg1, %c1_i32 : i32
    %c0_i32 = arith.constant 0 : i32
    %1 = arith.minsi %0, %c0_i32 : i32
    %c2_i32 = arith.constant 2 : i32
    %2 = arith.muli %1, %c2_i32 : i32
    %c0_i32_0 = arith.constant 0 : i32
    %c0_i32_1 = arith.constant 0 : i32
    return %arg0, %c0_i32_0, %2 : i32, i32, i32
  }
  func.func @transform_2(%arg0: i32, %arg1: i32) -> (i32, i32) {
    %c0_i32 = arith.constant 0 : i32
    %c0_i32_0 = arith.constant 0 : i32
    %c0_i32_1 = arith.constant 0 : i32
    return %c0_i32, %c0_i32_0 : i32, i32
  }
  func.func @transform_3(%arg0: i32, %arg1: i32) -> (i32, i32, i32) {
    %c0_i32 = arith.constant 0 : i32
    %c0_i32_0 = arith.constant 0 : i32
    %c0_i32_1 = arith.constant 0 : i32
    return %arg0, %c0_i32, %c0_i32_0 : i32, i32, i32
  }
  func.func @transform_4(%arg0: i32, %arg1: i32) -> (i32, i32, i32) {
    %c0_i32 = arith.constant 0 : i32
    %c0_i32_0 = arith.constant 0 : i32
    %c0_i32_1 = arith.constant 0 : i32
    return %arg0, %c0_i32, %c0_i32_0 : i32, i32, i32
  }
  func.func @transform_5(%arg0: i32, %arg1: i32) -> (i32, i32) {
    %c0_i32 = arith.constant 0 : i32
    %c0_i32_0 = arith.constant 0 : i32
    %c0_i32_1 = arith.constant 0 : i32
    return %c0_i32, %c0_i32_0 : i32, i32
  }
  func.func @transform_6(%arg0: i32, %arg1: i32) -> (i32, i32) {
    %c0_i32 = arith.constant 0 : i32
    %c0_i32_0 = arith.constant 0 : i32
    %c0_i32_1 = arith.constant 0 : i32
    return %c0_i32, %c0_i32_0 : i32, i32
  }
  func.func @transform_7(%arg0: i32, %arg1: i32) -> (i32, i32, i32) {
    %c0_i32 = arith.constant 0 : i32
    %c0_i32_0 = arith.constant 0 : i32
    %c0_i32_1 = arith.constant 0 : i32
    %c0_i32_2 = arith.constant 0 : i32
    return %c0_i32, %c0_i32_0, %c0_i32_1 : i32, i32, i32
  }
  func.func @transform_8(%arg0: i32, %arg1: i32) -> (i32, i32) {
    %c0_i32 = arith.constant 0 : i32
    %c0_i32_0 = arith.constant 0 : i32
    %c0_i32_1 = arith.constant 0 : i32
    return %c0_i32, %c0_i32_0 : i32, i32
  }
  func.func @transform_9(%arg0: i32, %arg1: i32) -> (i32, i32, i32) {
    %c0_i32 = arith.constant 0 : i32
    %c0_i32_0 = arith.constant 0 : i32
    return %arg0, %c0_i32, %arg1 : i32, i32, i32
  }
  func.func @transform_10(%arg0: i32, %arg1: i32) -> (i32, i32, i32) {
    %c0_i32 = arith.constant 0 : i32
    %c0_i32_0 = arith.constant 0 : i32
    %c0_i32_1 = arith.constant 0 : i32
    return %arg0, %c0_i32, %c0_i32_0 : i32, i32, i32
  }
  func.func @transform_11(%arg0: i32, %arg1: i32) -> (i32, i32, i32) {
    %c0_i32 = arith.constant 0 : i32
    %c0_i32_0 = arith.constant 0 : i32
    %c0_i32_1 = arith.constant 0 : i32
    return %arg0, %c0_i32, %c0_i32_0 : i32, i32, i32
  }
}

</mosaic_0001>

<bundles_post_ra>
// kernel: _lambda_.5
= control target key start
LH: loop header
LB: loop body
LE: loop exit
PB: predicated region body
PF: predicated region fallthrough
CT: control target
= control target key end

     0   :  { %s556_s18 = smov 0   ;;  %s558_s19 = smov 0   ;;  %s605_s0 = inlined_call_operand.vmem [shape: f32[2,8,256], index: 0, kind: input, shape index: {}]   ;;  %s606_s1 = inlined_call_operand.vmem [shape: f32[2,8,1], index: 1, kind: input, shape index: {}]   ;;  %s607_s2 = inlined_call_operand.vmem [shape: f32[2,8,1], index: 2, kind: input, shape index: {}]   ;;  %s608_s3 = inlined_call_operand.vmem [shape: f32[8,1], index: 3, kind: input, shape index: {}]   ;;  %s609_s4 = inlined_call_operand.vmem [shape: f32[8,1], index: 4, kind: input, shape index: {}]   ;;  %s610_s5 = inlined_call_operand.vmem [shape: f32[2,8,256], index: 5, kind: output, shape index: {}]  }
   0x1   :  { %s560_s20 = smov 0  }
   0x2 LB: > { %s27_s21 = sadd.s32 1, %s519_s19  ;;  %p459_p0 = scmp.ge.s32.totalorder %s523_s20, 1  ;;  %s523_s20 = sphi %s560_s20, %s15_s20   ;;  %s519_s19 = sphi %s558_s19, %s612_s19   ;;  %s515_s18 = sphi %s556_s18, %s611_s18  }
   0x3   : > { %p29_p1 = scmp.ge.s32.totalorder %s27_s21, 2  ;;  %p226_p2 = scmp.lt.s32.totalorder %s523_s20, 3 }
   0x5   : > { %s614_s21 = smov (%p29_p1, %s27_s21), 0  ;;  %p227_p3 = pnand %p459_p0, %p226_p2 }
   0x6   : > { %p271_p4 = scmp.lt.s32.totalorder (!%p227_p3), %s515_s18, 1 }
   0x7   : > { %230 = sbr.rel (%p227_p3) target bundleno = 172 (0xac), region = 40 }
   0xc   : > { %v316_v0 = vld [vmem:[%s608_s3] sm:$0xff]  ;;  %v525_v1 = vmov 0   ;;  %s616_s18 = smov (!%p271_p4, %s515_s18), 1 }
   0xd   : > { %496 = vset.pattern.permute.xlu1 %v525_v1  ;;  %495 = vset.pattern.permute.xlu0 %v525_v1  ;;  %v324_v2 = vld [vmem:[%s609_s4] sm:$0xff]  ;;  %s462_s26 = sshll.u32 %s616_s18, 3  ;;  %s468_s8 = sshll.u32 %s616_s18, 4 }
   0xe   : > { %319 = vperm.xlu1 %496, %v316_v0   ;;  %s283_s29 = scalar_lea.vmem %s606_s1, %s462_s26  ;;  %s287_s7 = scalar_lea.vmem %s607_s2, %s462_s26 }
   0xf   : > { %v300_v3 = vld [vmem:[%s283_s29] sm:$0xff]  ;;  %s278_s11 = scalar_lea.vmem %s605_s0, %s468_s8  ;;  %s296_s14 = scalar_lea.vmem %s610_s5, %s468_s8 }
  0x10   : > { %303 = vperm.xlu0 %495, %v300_v3   ;;  %v308_v4 = vld [vmem:[%s287_s7] sm:$0xff]  ;;  %v299_v7 = vld [vmem:[%s278_s11 + $0x8] sm:$0xff] }
  0x11   : > { %v298_v6 = vld [vmem:[%s278_s11] sm:$0xff] }
  0x12   : > { %327 = vperm.xlu1 %496, %v324_v2  }
  0x14   : > { %311 = vperm.xlu0 %495, %v308_v4  }
  0x89   : > { %v320_v8 = vpop.permute.xlu1 %319 }
  0x8b   : > { %v304_v5 = vpop.permute.xlu0 %303 }
  0x8c   : > { %v306_v9 = vsub.f32 %v298_v6, %v304_v5  ;;  %v307_v10 = vsub.f32 %v299_v7, %v304_v5 }
  0x8d   : > { %v328_v16 = vpop.permute.xlu1 %327 }
  0x8f   : > { %v312_v11 = vpop.permute.xlu0 %311 }
  0x90   : > { %v314_v12 = vmul.f32 %v312_v11, %v306_v9  ;;  %v315_v13 = vmul.f32 %v312_v11, %v307_v10 }
  0x92   : > { %v322_v14 = vmul.f32 %v320_v8, %v314_v12  ;;  %v323_v15 = vmul.f32 %v320_v8, %v315_v13 }
  0x94   : > { %v330_v17 = vadd.f32 %v328_v16, %v322_v14  ;;  %v331_v18 = vadd.f32 %v328_v16, %v323_v15 }
  0x96   : > { %v334_v19 = vmul.f32 0.70710677, %v330_v17  ;;  %v335_v20 = vmul.f32 0.70710677, %v331_v18  ;;  %v332_v23 = vmul.f32 0.5, %v330_v17  ;;  %v333_v25 = vmul.f32 0.5, %v331_v18 }
  0x98   : > { %497 = verf.f32 %v334_v19 }
  0x99   : > { %499 = verf.f32 %v335_v20 }
  0xa5   : > { %v498_v21 = vpop.eup %497 }
  0xa6   : > { %v500_v22 = vpop.eup %499  ;;  %v338_v24 = vadd.f32 1.0, %v498_v21 }
  0xa7   : > { %v339_v26 = vadd.f32 1.0, %v500_v22 }
  0xa8   : > { %v340_v27 = vmul.f32 %v338_v24, %v332_v23 }
  0xa9   : > { %v341_v28 = vmul.f32 %v339_v26, %v333_v25 }
  0xaa   : > { %342 = vst [vmem:[%s296_s14] sm:$0xff] %v340_v27 }
  0xab   : > { %343 = vst [vmem:[%s296_s14 + $0x8] sm:$0xff] %v341_v28 }
  0xac PF: > { %s15_s20 = sadd.s32 1, %s523_s20   ;;  %s611_s18 = smov %s519_s19 }
  0xad   : > { %p12_p5 = scmp.ge.s32.totalorder %s15_s20, 4   ;;  %s612_s19 = smov %s614_s21 }
  0xaf   :  { %14 = sbr.rel (!%p12_p5) target bundleno = 2 (0x2), region = 76 }

// kernel: _lambda_.3
= control target key start
LH: loop header
LB: loop body
LE: loop exit
PB: predicated region body
PF: predicated region fallthrough
CT: control target
= control target key end

     0   :  { %s514_s12 = smov 0   ;;  %s516_s13 = smov 0   ;;  %s564_s0 = inlined_call_operand.vmem [shape: f32[2,4,256], index: 0, kind: input, shape index: {}]   ;;  %s565_s1 = inlined_call_operand.vmem [shape: f32[8,4], index: 1, kind: input, shape index: {}]   ;;  %s566_s2 = inlined_call_operand.vmem [shape: f32[2,8,1], index: 2, kind: output, shape index: {0}]   ;;  %s567_s3 = inlined_call_operand.vmem [shape: f32[2,8,1], index: 3, kind: output, shape index: {1}]  }
   0x1   :  { %s518_s14 = smov 0  }
   0x2 LB: > { %s26_s15 = sadd.s32 1, %s487_s13  ;;  %p430_p0 = scmp.ge.s32.totalorder %s491_s14, 1  ;;  %s491_s14 = sphi %s518_s14, %s14_s14   ;;  %s487_s13 = sphi %s516_s13, %s569_s13   ;;  %s483_s12 = sphi %s514_s12, %s568_s12  }
   0x3   : > { %p28_p1 = scmp.ge.s32.totalorder %s26_s15, 2  ;;  %p159_p2 = scmp.lt.s32.totalorder %s491_s14, 3 }
   0x5   : > { %s571_s15 = smov (%p28_p1, %s26_s15), 0  ;;  %p160_p3 = pnand %p430_p0, %p159_p2 }
   0x6   : > { %p191_p4 = scmp.lt.s32.totalorder (!%p160_p3), %s483_s12, 1 }
   0x7   : > { %163 = sbr.rel (%p160_p3) target bundleno = 392 (0x188), region = 28 }
   0xc   : > { %vm212_vm0 = vcmask 7168   ;;  %v493_v0 = vmov 0.0   ;;  %s573_s12 = smov (!%p191_p4, %s483_s12), 1  ;;  %vm223_vm1 = vcmask 1043456   ;;  %v215_v3 = vld [vmem:[%s565_s1] sm:$0xff]  ;;  %vm219_vm2 = vcmask 31744  }
   0xd   : > { %213 = vst.msk [vmem:[#allocation2] sm:$0xff] %vm212_vm0, %v493_v0  ;;  %214 = vst.msk [vmem:[#allocation3] sm:$0xff] %vm212_vm0, %v493_v0  ;;  %292 = vmatprep.mubr.f32.mxu0 %v493_v0  ;;  %s534_s16 = sshll.u32 %s573_s12, 3 }
   0xe   : > { %s198_s19 = scalar_lea.vmem %s564_s0, %s534_s16  ;;  %s203_s24 = scalar_lea.vmem %s566_s2, %s534_s16 }
   0xf   : > { %v216_v1 = vld [vmem:[%s198_s19] sm:$0xff]  ;;  %s207_s27 = scalar_lea.vmem %s567_s3, %s534_s16 }
  0x10   : > { %v218_v2 = vcombine.high %v216_v1, %v216_v1 }
  0x12   : > { %435 = vmatprep.subr.msk.mxu0 %vm223_vm1, %v218_v2 }
  0x13   : > { %436 = vmatpush1.msk.msra.mxu0 %vm223_vm1, %v216_v1 }
  0x14   : > { %437 = vmatmul.mubr.msk.f32.vlgmr.msra.gmra.mxu0 %vm219_vm2, %v215_v3  ;;  %v299_v10 = vld [vmem:[#allocation2] sm:$0xff]  ;;  %v306_v13 = vld [vmem:[#allocation3] sm:$0xff] }
  0xd4   : > { %v294_v4 = vpop.f32.mrf.mxu0 }
  0xd5   : > { %v307_v8 = vmul.f32 %v294_v4, %v294_v4 }
  0xd6   : > { %v296_v5 = vpop.f32.mrf.mxu0 }
  0xd7   : > { %v308_v6 = vmul.f32 %v296_v5, %v296_v5  ;;  %v300_v7 = vadd.f32 %v296_v5, %v294_v4 }
  0xd9   : > { %301 = vadd.xlane.f32.xlu0 %v300_v7  ;;  %v309_v9 = vadd.f32 %v308_v6, %v307_v8 }
  0xdd   : > { %310 = vadd.xlane.f32.xlu0 %v309_v9 }
 0x162   : > { %v302_v11 = vpop.xlane.xlu0 %301 }
 0x163   : > { %v303_v12 = vadd.f32 %v302_v11, %v299_v10 }
 0x165   : > { %305 = vst.msk [vmem:[#allocation2] sm:$0xff] %vm212_vm0, %v303_v12 }
 0x166   : > { %v311_v14 = vpop.xlane.xlu0 %310 }
 0x167   : > { %v312_v15 = vadd.f32 %v311_v14, %v306_v13 }
 0x169   : > { %313 = vst.msk [vmem:[#allocation3] sm:$0xff] %vm212_vm0, %v312_v15 }
 0x16c   : > { %v317_v16 = vld [vmem:[#allocation2] sm:$0xff] }
 0x16d   : > { %v318_v17 = vmul.f32 0.00390625, %v317_v16 }
 0x16f   : > { %323 = vst.msk [vmem:[%s203_s24] sm:$0xff] %vm212_vm0, %v318_v17  ;;  %v321_v19 = vmul.f32 %v318_v17, %v318_v17 }
 0x170   : > { %v319_v18 = vld [vmem:[#allocation3] sm:$0xff] }
 0x171   : > { %v320_v20 = vmul.f32 0.00390625, %v319_v18 }
 0x173   : > { %v322_v21 = vsub.f32 %v320_v20, %v321_v19 }
 0x175   : > { %v324_v22 = vmax.f32 %v322_v21, 0.0 }
 0x177   : > { %v325_v23 = vadd.f32 1e-05, %v324_v22 }
 0x179   : > { %467 = vrsqrt.f32 %v325_v23 }
 0x186   : > { %v468_v24 = vpop.eup %467 }
 0x187   : > { %327 = vst.msk [vmem:[%s207_s27] sm:$0xff] %vm212_vm0, %v468_v24 }
 0x188 PF: > { %s14_s14 = sadd.s32 1, %s491_s14   ;;  %s568_s12 = smov %s487_s13 }
 0x189   : > { %p11_p5 = scmp.ge.s32.totalorder %s14_s14, 4   ;;  %s569_s13 = smov %s571_s15 }
 0x18b   :  { %13 = sbr.rel (!%p11_p5) target bundleno = 2 (0x2), region = 78 }

// kernel: _lambda_.4
= control target key start
LH: loop header
LB: loop body
LE: loop exit
PB: predicated region body
PF: predicated region fallthrough
CT: control target
= control target key end

     0   :  { %s4044_s17 = smov 0   ;;  %s4046_s18 = smov 0   ;;  %s4751_s0 = inlined_call_operand.vmem [shape: f32[2,4,256], index: 0, kind: input, shape index: {}, may-alias: {0,1}]   ;;  %s4752_s1 = inlined_call_operand.vmem [shape: f32[2,4,256], index: 1, kind: input, shape index: {}, may-alias: {0,1}]   ;;  %s4753_s2 = inlined_call_operand.vmem [shape: f32[8,4], index: 2, kind: input, shape index: {}]   ;;  %s4754_s3 = inlined_call_operand.vmem [shape: f32[2,8,1], index: 3, kind: input, shape index: {}]   ;;  %s4755_s4 = inlined_call_operand.vmem [shape: f32[2,8,1], index: 4, kind: input, shape index: {}]   ;;  %s4756_s5 = inlined_call_operand.vmem [shape: f32[8,1], index: 5, kind: input, shape index: {}]   ;;  %s4757_s6 = inlined_call_operand.vmem [shape: f32[8,1], index: 6, kind: input, shape index: {}]   ;;  %s4758_s7 = inlined_call_operand.vmem [shape: f32[27,8,8], index: 7, kind: input, shape index: {}]   ;;  %s4759_s8 = inlined_call_operand.vmem [shape: f32[9,256], index: 8, kind: input, shape index: {}]   ;;  %s4760_s9 = inlined_call_operand.vmem [shape: f32[2,8,256], index: 9, kind: output, shape index: {0}]   ;;  %s4761_s10 = inlined_call_operand.vmem [shape: f32[2,8,1], index: 10, kind: output, shape index: {1}]   ;;  %s4762_s11 = inlined_call_operand.vmem [shape: f32[2,8,1], index: 11, kind: output, shape index: {2}]  }
   0x1   :  { %s4048_s19 = smov 0  }
   0x2 LB: > { %s34_s20 = sadd.s32 1, %s3942_s18  ;;  %p3765_p0 = scmp.ge.s32.totalorder %s3946_s19, 1  ;;  %s3946_s19 = sphi %s4048_s19, %s22_s19   ;;  %s3942_s18 = sphi %s4046_s18, %s4778_s18   ;;  %s3938_s17 = sphi %s4044_s17, %s4777_s17  }
   0x3   : > { %p36_p1 = scmp.ge.s32.totalorder %s34_s20, 2  ;;  %p412_p2 = scmp.lt.s32.totalorder %s3946_s19, 3 }
   0x5   : > { %s4780_s20 = smov (%p36_p1, %s34_s20), 0  ;;  %p413_p3 = pnand %p3765_p0, %p412_p2 }
   0x6   : > { %p489_p4 = scmp.lt.s32.totalorder (!%p413_p3), %s3938_s17, 1  ;;  %s3951_s30 = smov (!%p413_p3), 1  }
   0x7   : > { %416 = sbr.rel (%p413_p3) target bundleno = 1003 (0x3eb), region = 56  ;;  %s3952_s14 = smov (!%p413_p3), 2  }
   0x8   : > { %s3953_s15 = smov (!%p413_p3), 9   ;;  %s3954_s22 = smov (!%p413_p3), 8  }
   0x9   : > { %s3955_s26 = smov (!%p413_p3), 10   ;;  %s3956_s29 = smov (!%p413_p3), 16  }
   0xa   : > { %s3957_s13 = smov (!%p413_p3), 17   ;;  %s4771_s21 = smov (!%p413_p3), 64  }
   0xb   : > { %s3962_s25 = smov (!%p413_p3), 72   ;;  %s3968_s12 = smov (!%p413_p3), 119  }
   0xc   : > { %v3948_v0 = vmov 0.0   ;;  %vm3949_vm0 = vmmov 0   ;;  %v557_v1 = vld [vmem:[%s4756_s5] sm:$0xff]  ;;  %vm549_vm1 = vcmask 523264   ;;  %v801_v2 = vlaneseq  ;;  %s4782_s17 = smov (!%p489_p4, %s3938_s17), 1 }
   0xd   : > { %3848 = vmatprep.subr.mxu1 %v3948_v0  ;;  %544 = vst [vmem:[#allocation2] sm:$0xff] %v3948_v0  ;;  %546 = vst [vmem:[#allocation2 + $0x10] sm:$0xff] %v3948_v0  ;;  %3850 = vmatprep.mubr.msk.f32.mxu1 %vm3949_vm0, %v3948_v0  ;;  %v3950_v3 = vmov 0   ;;  %s4075_s23 = sshll.u32 %s4782_s17, 3  ;;  %vm566_vm2 = vcmask 1043456   ;;  %v554_v5 = vld [vmem:[%s4753_s2] sm:$0xff] }
   0xe   : > { %635 = vmatprep.mubr.f32.mxu0 %v3948_v0  ;;  %3914 = vset.pattern.permute.xlu0 %v3950_v3  ;;  %550 = vst.msk [vmem:[#allocation3] sm:$0xff] %vm549_vm1, %v3948_v0  ;;  %v802_v4 = vshrl.u32 %v801_v2, 7  ;;  %s509_s28 = scalar_lea.vmem %s4752_s1, %s4075_s23  ;;  %vm562_vm3 = vcmask 31744   ;;  %v558_v6 = vld [vmem:[%s4757_s6] sm:$0xff]  ;;  %s496_s16 = scalar_lea.vmem %s4751_s0, %s4075_s23  ;;  %vm547_vm4 = vcmask 146432   ;;  %vm773_vm5 = vcmask 597064  }
   0xf   : > { %3913 = vset.pattern.permute.xlu1 %v3950_v3  ;;  %v3781_v8 = vld [vmem:[%s4759_s8 + $0x1] ss:$8 sm:$0x3]  ;;  %s517_s24 = scalar_lea.vmem %s4754_s3, %s4075_s23  ;;  %s521_s27 = scalar_lea.vmem %s4755_s4, %s4075_s23  ;;  %v3785_v14 = vld [vmem:[%s4759_s8 + $0x2] ss:$8 sm:$0x3] }
  0x10   : > { %658 = vperm.xlu1 %3913, %v557_v1   ;;  %v807_v7 = vsub.s32 1, %v802_v4  ;;  %v680_v9 = vld [vmem:[%s509_s28] sm:$0xf]  ;;  %v803_v17 = vsub.s32 0, %v802_v4  ;;  %s3965_s28 = smov 81   ;;  %548 = vst.msk [vmem:[#allocation2 + $0x18] sm:$0xff] %vm547_vm4, %v3948_v0 }
  0x11   : > { %3849 = vmatpush3.msk.msra.mxu1 %vm566_vm2, %v680_v9  ;;  %v559_v10 = vld [vmem:[%s496_s16] sm:$0xff]  ;;  %v3802_v31 = vld [vmem:[%s4759_s8 + $0x10] ss:$8 sm:$0x3]  ;;  %s3958_s16 = smov 18   ;;  %vm551_vm6 = vcmask 7168  }
  0x12   : > { %3851 = vmatmul.mubr.msk.f32.vlgmr.msra.gmra.mxu1 %vm562_vm3, %v554_v5  ;;  %v561_v11 = vcombine.high %v559_v10, %v559_v10  ;;  %v555_v12 = vld [vmem:[%s517_s24] sm:$0xff]  ;;  %v825_v13 = vrot.slane %v3781_v8, %v807_v7  ;;  %v1013_v16 = vrot.slane %v3785_v14, %v807_v7  ;;  %v821_v21 = vrot.slane %v3781_v8, %v803_v17  ;;  %s3961_s24 = smov 66  }
  0x13   : > { %644 = vperm.xlu0 %3914, %v555_v12   ;;  %v556_v15 = vld [vmem:[%s521_s27] sm:$0xff]  ;;  %996 = vmatprep.mubr.f32.mxu1 %v3948_v0  ;;  %v1009_v24 = vrot.slane %v3785_v14, %v803_v17  ;;  %v1679_v32 = vrot.slane %v3802_v31, %v807_v7  ;;  %v1675_v37 = vrot.slane %v3802_v31, %v803_v17  ;;  %s3964_s27 = smov 80   ;;  %vm795_vm7 = vcmask 72704  }
  0x14   : > { %665 = vperm.xlu1 %3913, %v558_v6   ;;  %3776 = vmatprep.subr.msk.mxu0 %vm566_vm2, %v561_v11  ;;  %v3788_v18 = vld [vmem:[%s4759_s8 + $0x3] ss:$8 sm:$0x3]  ;;  %v3793_v22 = vld [vmem:[%s4759_s8 + $0x5] ss:$8 sm:$0x3] }
  0x15   : > { %3777 = vmatpush1.msk.msra.mxu0 %vm566_vm2, %v559_v10  ;;  %v768_v19 = vld [vmem:[#allocation3] sm:$0xff]  ;;  %v1128_v20 = vrot.slane %v3788_v18, %v807_v7  ;;  %v1334_v23 = vrot.slane %v3793_v22, %v807_v7  ;;  %v1124_v27 = vrot.slane %v3788_v18, %v803_v17  ;;  %v1330_v30 = vrot.slane %v3793_v22, %v803_v17 }
  0x16   : > { %3778 = vmatmul.mubr.msk.f32.vlgmr.msra.gmra.mxu0 %vm562_vm3, %v554_v5  ;;  %v3796_v25 = vld [vmem:[%s4759_s8 + $0x6] ss:$8 sm:$0x3]  ;;  %v3799_v28 = vld [vmem:[%s4759_s8 + $0x7] ss:$8 sm:$0x3] }
  0x17   : > { %651 = vperm.xlu0 %3914, %v556_v15   ;;  %922 = vmatprep.mubr.f32.mxu0 %v3948_v0  ;;  %v1449_v26 = vrot.slane %v3796_v25, %v807_v7  ;;  %v1564_v29 = vrot.slane %v3799_v28, %v807_v7  ;;  %v1445_v33 = vrot.slane %v3796_v25, %v803_v17  ;;  %v799_v34 = vld [vmem:[%s4759_s8] ss:$8 sm:$0x3]  ;;  %vm786_vm8 = vcmask 1048136  }
  0x18   : > { %828 = vrot.lane.b32.xlu1 %v825_v13, %s3951_s30  ;;  %v4130_v35 = vrot.slane %v799_v34, %v807_v7  ;;  %v1560_v36 = vrot.slane %v3799_v28, %v803_v17  ;;  %v4134_v38 = vrot.slane %v799_v34, %v803_v17  ;;  %552 = vst.msk [vmem:[#allocation4] sm:$0xff] %vm551_vm6, %v3948_v0  ;;  %553 = vst.msk [vmem:[#allocation5] sm:$0xff] %vm551_vm6, %v3948_v0  ;;  %vm781_vm9 = vcmask 596992  }
  0x19   : > { %vm1018_vm10 = vcmask 15360   ;;  %vm1454_vm11 = vcmask 130048   ;;  %vm854_vm12 = vcmask 64512   ;;  %vm1339_vm13 = vcmask 80896  }
  0x1a   : > { %vm1891_vm14 = vcmask 531456   ;;  %vm1569_vm15 = vcmask 138240   ;;  %vm2099_vm0 = vcmask 588800   ;;  %vm2292_vm2 = vcmask 605184  }
  0x1b   : > { %770 = vrot.lane.b32.xlu0 %v768_v19, %s3953_s15  ;;  %s3971_s15 = smov 126   ;;  %vm2500_vm3 = vcmask 662528  }
  0x1c   : > { %1016 = vrot.lane.b32.xlu1 %v1013_v16, %s3952_s14 }
  0x1f   : > { %826 = vrot.lane.b32.xlu0 %v821_v21, %s3951_s30  ;;  %s3967_s30 = smov 73  }
  0x20   : > { %1131 = vrot.lane.b32.xlu1 %v1128_v20, %s3954_s22 }
  0x23   : > { %1014 = vrot.lane.b32.xlu0 %v1009_v24, %s3952_s14  ;;  %s3970_s14 = smov 127  }
  0x24   : > { %1337 = vrot.lane.b32.xlu1 %v1334_v23, %s3955_s26 }
  0x27   : > { %1129 = vrot.lane.b32.xlu0 %v1124_v27, %s3954_s22  ;;  %s3960_s22 = smov 65  }
  0x28   : > { %1452 = vrot.lane.b32.xlu1 %v1449_v26, %s3956_s29 }
  0x2b   : > { %1335 = vrot.lane.b32.xlu0 %v1330_v30, %s3955_s26  ;;  %s3963_s26 = smov 74  }
  0x2c   : > { %1567 = vrot.lane.b32.xlu1 %v1564_v29, %s3957_s13 }
  0x2f   : > { %1450 = vrot.lane.b32.xlu0 %v1445_v33, %s3956_s29  ;;  %s3966_s29 = smov 82  }
  0x30   : > { %1682 = vrot.lane.b32.xlu1 %v1679_v32, %s3958_s16 }
  0x33   : > { %1565 = vrot.lane.b32.xlu0 %v1560_v36, %s3957_s13  ;;  %s3969_s13 = smov 55  }
  0x34   : > { %1786 = vrot.lane.b32.xlu1 %v4130_v35, %s4771_s21 }
  0x37   : > { %1680 = vrot.lane.b32.xlu0 %v1675_v37, %s3958_s16  ;;  %s3972_s16 = smov 120  }
  0x38   : > { %1889 = vrot.lane.b32.xlu1 %v825_v13, %s3960_s22 }
  0x3b   : > { %1784 = vrot.lane.b32.xlu0 %v4134_v38, %s4771_s21 }
  0x3c   : > { %1993 = vrot.lane.b32.xlu1 %v1013_v16, %s3961_s24 }
  0x3f   : > { %1887 = vrot.lane.b32.xlu0 %v821_v21, %s3960_s22  ;;  %s3973_s22 = smov 112  }
  0x40   : > { %2097 = vrot.lane.b32.xlu1 %v1128_v20, %s3962_s25 }
  0x43   : > { %1991 = vrot.lane.b32.xlu0 %v1009_v24, %s3961_s24  ;;  %s3974_s24 = smov 118  }
  0x44   : > { %2290 = vrot.lane.b32.xlu1 %v1334_v23, %s3963_s26 }
  0x47   : > { %2095 = vrot.lane.b32.xlu0 %v1124_v27, %s3962_s25  ;;  %s3975_s25 = smov 111  }
  0x48   : > { %2394 = vrot.lane.b32.xlu1 %v1449_v26, %s3964_s27 }
  0x4b   : > { %2288 = vrot.lane.b32.xlu0 %v1330_v30, %s3963_s26  ;;  %s3976_s26 = smov 110  }
  0x4c   : > { %2498 = vrot.lane.b32.xlu1 %v1564_v29, %s3965_s28 }
  0x4f   : > { %2392 = vrot.lane.b32.xlu0 %v1445_v33, %s3964_s27  ;;  %s3977_s27 = smov 63  }
  0x50   : > { %2602 = vrot.lane.b32.xlu1 %v1679_v32, %s3966_s29 }
  0x53   : > { %2496 = vrot.lane.b32.xlu0 %v1560_v36, %s3965_s28  ;;  %s4763_s28 = smov 56  }
  0x57   : > { %2600 = vrot.lane.b32.xlu0 %v1675_v37, %s3966_s29  ;;  %s4765_s29 = smov 54  }
  0x8b   : > { %v659_v42 = vpop.permute.xlu1 %658 }
  0x8e   : > { %v645_v39 = vpop.permute.xlu0 %644 }
  0x8f   : > { %v666_v48 = vpop.permute.xlu1 %665 }
  0x92   : > { %v652_v40 = vpop.permute.xlu0 %651 }
  0x93   : > { %v4147_v13 = vpop.permute.xlu1 %828 }
  0x96   : > { %v771_v41 = vpop.permute.xlu0 %770 }
  0x97   : > { %774 = vst.msk [vmem:[#allocation2] sm:$0xff] %vm773_vm5, %v771_v41  ;;  %v4151_v15 = vpop.permute.xlu1 %1016  ;;  %vm2396_vm5 = vcmask 654336  }
  0x9a   : > { %v4149_v14 = vpop.permute.xlu0 %826 }
  0x9b   : > { %v4155_v17 = vpop.permute.xlu1 %1131 }
  0x9e   : > { %v4153_v16 = vpop.permute.xlu0 %1014 }
  0x9f   : > { %v4159_v19 = vpop.permute.xlu1 %1337 }
  0xa2   : > { %v4157_v18 = vpop.permute.xlu0 %1129 }
  0xa3   : > { %v4163_v21 = vpop.permute.xlu1 %1452 }
  0xa6   : > { %v4161_v20 = vpop.permute.xlu0 %1335 }
  0xa7   : > { %v4167_v23 = vpop.permute.xlu1 %1567 }
  0xaa   : > { %v4165_v22 = vpop.permute.xlu0 %1450 }
  0xab   : > { %v4171_v25 = vpop.permute.xlu1 %1682 }
  0xae   : > { %v4169_v24 = vpop.permute.xlu0 %1565 }
  0xaf   : > { %v4175_v27 = vpop.permute.xlu1 %1786 }
  0xb2   : > { %v4173_v26 = vpop.permute.xlu0 %1680 }
  0xb3   : > { %v4179_v29 = vpop.permute.xlu1 %1889 }
  0xb6   : > { %v4177_v28 = vpop.permute.xlu0 %1784 }
  0xb7   : > { %v4183_v31 = vpop.permute.xlu1 %1993 }
  0xba   : > { %v4181_v30 = vpop.permute.xlu0 %1887 }
  0xbb   : > { %v4187_v33 = vpop.permute.xlu1 %2097 }
  0xbe   : > { %v4185_v32 = vpop.permute.xlu0 %1991 }
  0xbf   : > { %v4191_v36 = vpop.permute.xlu1 %2290 }
  0xc2   : > { %v4189_v34 = vpop.permute.xlu0 %2095 }
  0xc6   : > { %v4193_v37 = vpop.permute.xlu0 %2288 }
  0xd2   : > { %v750_v43 = vpop.f32.mrf.mxu1 }
  0xd3   : > { %v754_v44 = vsub.f32 %v750_v43, %v645_v39 }
  0xd4   : > { %v3852_v45 = vpop.f32.mrf.mxu1 }
  0xd5   : > { %v755_v46 = vmul.f32 %v754_v44, %v652_v40 }
  0xd6   : > { %v637_v47 = vpop.f32.mrf.mxu0 }
  0xd7   : > { %v647_v49 = vsub.f32 %v637_v47, %v645_v39  ;;  %v756_v50 = vmul.f32 %v755_v46, %v659_v42 }
  0xd8   : > { %v639_v51 = vpop.f32.mrf.mxu0 }
  0xd9   : > { %v654_v52 = vmul.f32 %v652_v40, %v647_v49  ;;  %v757_v53 = vadd.f32 %v756_v50, %v666_v48  ;;  %v648_v54 = vsub.f32 %v639_v51, %v645_v39  ;;  %v4195_v39 = vpop.permute.xlu1 %2394 }
  0xdb   : > { %v661_v55 = vmul.f32 %v659_v42, %v654_v52  ;;  %v759_v56 = vmul.f32 0.70710677, %v757_v53  ;;  %v655_v57 = vmul.f32 %v652_v40, %v648_v54  ;;  %v758_v1 = vmul.f32 0.5, %v757_v53  ;;  %v4197_v40 = vpop.permute.xlu0 %2392 }
  0xdd   : > { %v668_v58 = vadd.f32 %v666_v48, %v661_v55  ;;  %3916 = verf.f32 %v759_v56  ;;  %v662_v59 = vmul.f32 %v659_v42, %v655_v57  ;;  %v4199_v41 = vpop.permute.xlu1 %2498  ;;  %v4229_v55 = vsel %vm1018_vm10, %v4153_v16, %v4151_v15 }
  0xde   : > { %vm1037_vm10 = vcmask 1031168  }
  0xdf   : > { %v672_v60 = vmul.f32 0.70710677, %v668_v58  ;;  %v669_v61 = vadd.f32 %v666_v48, %v662_v59  ;;  %v670_v6 = vmul.f32 0.5, %v668_v58  ;;  %v4201_v42 = vpop.permute.xlu0 %2496  ;;  %v4240_v58 = vsel %vm1454_vm11, %v4165_v22, %v4163_v21 }
  0xe0   : > { %vm1151_vm11 = vcmask 982016  }
  0xe1   : > { %3918 = verf.f32 %v672_v60  ;;  %v673_v62 = vmul.f32 0.70710677, %v669_v61  ;;  %v671_v10 = vmul.f32 0.5, %v669_v61  ;;  %v4203_v43 = vpop.permute.xlu1 %2602  ;;  %v4249_v60 = vsel %vm547_vm4, %v4173_v26, %v4171_v25 }
  0xe2   : > { %vm1995_vm4 = vcmask 539648  }
  0xe3   : > { %3920 = verf.f32 %v673_v62  ;;  %v4205_v44 = vpop.permute.xlu0 %2600 }
  0xea   : > { %v3917_v63 = vpop.eup %3916 }
  0xeb   : > { %v761_v2 = vadd.f32 1.0, %v3917_v63 }
  0xed   : > { %v762_v3 = vmul.f32 %v761_v2, %v758_v1 }
  0xee   : > { %v3919_v4 = vpop.eup %3918 }
  0xef   : > { %v767_v5 = vmul.f32 0.0, %v762_v3  ;;  %v676_v7 = vadd.f32 1.0, %v3919_v4 }
  0xf0   : > { %v3921_v8 = vpop.eup %3920 }
  0xf1   : > { %791 = vrot.lane.b32.xlu1 %v767_v5, %s3967_s30  ;;  %v678_v9 = vmul.f32 %v676_v7, %v670_v6  ;;  %v677_v11 = vadd.f32 1.0, %v3921_v8 }
  0xf3   : > { %777 = vrot.lane.b32.xlu0 %v678_v9, %s3967_s30  ;;  %v4144_v12 = vmul.f32 %v677_v11, %v671_v10 }
  0xf5   : > { %779 = vrot.lane.b32.xlu1 %v4144_v12, %s3967_s30  ;;  %s4767_s30 = smov 47  }
 0x163   : > { %v792_v45 = vpop.permute.xlu1 %791 }
 0x164   : > { %796 = vst.msk [vmem:[#allocation2 + $0x18] sm:$0xff] %vm795_vm7, %v792_v45  ;;  %vm2604_vm7 = vcmask 670720  }
 0x165   : > { %v778_v46 = vpop.permute.xlu0 %777 }
 0x166   : > { %787 = vst.msk [vmem:[#allocation2] sm:$0xff] %vm786_vm8, %v778_v46 }
 0x167   : > { %v780_v47 = vpop.permute.xlu1 %779 }
 0x168   : > { %v4207_v48 = vsel %vm781_vm9, %v778_v46, %v780_v47  ;;  %789 = vst.msk [vmem:[#allocation2 + $0x10] sm:$0xff] %vm781_vm9, %v780_v47  ;;  %vm849_vm9 = vcmask 1039360  }
 0x169   : > { %794 = vst.msk [vmem:[#allocation2 + $0x10] sm:$0xff] %vm786_vm8, %v792_v45  ;;  %v812_v49 = vmul.f32 %v4130_v35, %v4207_v48  ;;  %vm1243_vm8 = vcmask 973824  }
 0x16b   : > { %v4211_v50 = vld [vmem:[#allocation2 + $0x18] sm:$0xff]  ;;  %962 = vmatprep.subr.mxu1 %v812_v49 }
 0x16c   : > { %3078 = vrot.lane.b32.xlu1 %v4211_v50, %s3968_s12  ;;  %v2789_v54 = vmul.f32 %v4211_v50, %v4147_v13  ;;  %v2883_v56 = vmul.f32 %v4211_v50, %v4151_v15  ;;  %v2977_v61 = vmul.f32 %v4211_v50, %v4155_v17  ;;  %v3256_v63 = vmul.f32 %v4211_v50, %v4163_v21 }
 0x16d   : > { %v4215_v51 = vld [vmem:[#allocation2] sm:$0xff]  ;;  %v3162_v1 = vmul.f32 %v4211_v50, %v4159_v19  ;;  %v3350_v3 = vmul.f32 %v4211_v50, %v4167_v23 }
 0x16e   : > { %2201 = vrot.lane.b32.xlu0 %v4215_v51, %s3969_s13  ;;  %v811_v52 = vmul.f32 %v4134_v38, %v4215_v51  ;;  %v1023_v2 = vmul.f32 %v4153_v16, %v4215_v51  ;;  %v1459_v4 = vmul.f32 %v4165_v22, %v4215_v51  ;;  %v835_v5 = vmul.f32 %v4149_v14, %v4215_v51 }
 0x16f   : > { %v1689_v6 = vmul.f32 %v4173_v26, %v4215_v51  ;;  %v1137_v7 = vmul.f32 %v4157_v18, %v4215_v51  ;;  %v1896_v8 = vmul.f32 %v4181_v30, %v4215_v51  ;;  %v1344_v9 = vmul.f32 %v4161_v20, %v4215_v51 }
 0x170   : > { %v4221_v53 = vld [vmem:[#allocation2 + $0x10] sm:$0xff]  ;;  %1237 = vrot.lane.b32.xlu1 %v4215_v51, %s3968_s12  ;;  %963 = vmatpush1.msra.mxu1 %v811_v52  ;;  %v2104_v10 = vmul.f32 %v4189_v34, %v4215_v51  ;;  %v1574_v11 = vmul.f32 %v4169_v24, %v4215_v51  ;;  %v2297_v45 = vmul.f32 %v4193_v37, %v4215_v51 }
 0x171   : > { %v4236_v57 = vmul.f32 %v4229_v55, %v4221_v53  ;;  %v4244_v59 = vmul.f32 %v4240_v58, %v4221_v53  ;;  %v4256_v62 = vmul.f32 %v4249_v60, %v4221_v53  ;;  %v1793_v46 = vmul.f32 %v4177_v28, %v4215_v51 }
 0x172   : > { %2799 = vrot.lane.b32.xlu0 %v2789_v54, %s3970_s14  ;;  %v2505_v47 = vmul.f32 %v4201_v42, %v4215_v51  ;;  %v2000_v49 = vmul.f32 %v4185_v32, %v4215_v51  ;;  %v2401_v52 = vmul.f32 %v4197_v40, %v4215_v51  ;;  %v2609_v54 = vmul.f32 %v4205_v44, %v4215_v51 }
 0x173   : > { %v1139_v51 = vmul.f32 %v4155_v17, %v4221_v53 }
 0x174   : > { %2893 = vrot.lane.b32.xlu1 %v2883_v56, %s3971_s15  ;;  %v837_v56 = vmul.f32 %v4147_v13, %v4221_v53 }
 0x176   : > { %2987 = vrot.lane.b32.xlu0 %v2977_v61, %s3972_s16  ;;  %v1024_v61 = vmul.f32 %v4229_v55, %v4207_v48  ;;  %v1460_v55 = vmul.f32 %v4240_v58, %v4207_v48  ;;  %v1576_v58 = vmul.f32 %v4167_v23, %v4221_v53 }
 0x178   : > { %3266 = vrot.lane.b32.xlu1 %v3256_v63, %s3973_s22  ;;  %v1346_v63 = vmul.f32 %v4159_v19, %v4221_v53 }
 0x17a   : > { %3172 = vrot.lane.b32.xlu0 %v3162_v1, %s3974_s24  ;;  %v813_v1 = vld [vmem:[%s4758_s7] sm:$0xff] }
 0x17b   : > { %3784 = vmatmul.mubr.msk.f32.vlgmr.msra.gmra.mxu1 %vm854_vm12, %v813_v1 }
 0x17c   : > { %1031 = vrot.lane.b32.xlu1 %v1023_v2, %s3971_s15  ;;  %v831_v2 = vsel %vm551_vm6, %v4149_v14, %v4147_v13  ;;  %1223 = vmatprep.mubr.f32.mxu1 %v3948_v0  ;;  %v1690_v13 = vmul.f32 %v4249_v60, %v4207_v48  ;;  %v1892_v60 = vsel %vm1891_vm14, %v4181_v30, %v4179_v29  ;;  %vm1473_vm14 = vcmask 916480  }
 0x17e   : > { %3360 = vrot.lane.b32.xlu0 %v3350_v3, %s3975_s25  ;;  %v836_v3 = vmul.f32 %v831_v2, %v4207_v48 }
 0x180   : > { %1467 = vrot.lane.b32.xlu1 %v1459_v4, %s3973_s22  ;;  %v1025_v4 = vmul.f32 %v4151_v15, %v4221_v53  ;;  %v1795_v15 = vmul.f32 %v4175_v27, %v4221_v53 }
 0x182   : > { %843 = vrot.lane.b32.xlu0 %v835_v5, %s3970_s14  ;;  %v1133_v5 = vsel %vm854_vm12, %v4157_v18, %v4155_v17 }
 0x184   : > { %1697 = vrot.lane.b32.xlu1 %v1689_v6, %s3976_s26  ;;  %v1138_v6 = vmul.f32 %v1133_v5, %v4207_v48 }
 0x186   : > { %1145 = vrot.lane.b32.xlu0 %v1137_v7, %s3972_s16  ;;  %v4368_v7 = vsel %vm1339_vm13, %v4161_v20, %v4159_v19  ;;  %v2002_v19 = vmul.f32 %v4183_v31, %v4221_v53  ;;  %vm1358_vm13 = vcmask 965632  }
 0x187   : > { %v1345_v17 = vmul.f32 %v4368_v7, %v4207_v48 }
 0x188   : > { %1904 = vrot.lane.b32.xlu1 %v1896_v8, %s3977_s27  ;;  %v1897_v8 = vmul.f32 %v1892_v60, %v4207_v48 }
 0x18a   : > { %1352 = vrot.lane.b32.xlu0 %v1344_v9, %s3974_s24  ;;  %v1461_v9 = vmul.f32 %v4163_v21, %v4221_v53 }
 0x18c   : > { %2112 = vrot.lane.b32.xlu1 %v2104_v10, %s4763_s28  ;;  %s3981_s28 = smov 62   ;;  %v4385_v10 = vsel %vm1569_vm15, %v4169_v24, %v4167_v23  ;;  %v2293_v23 = vsel %vm2292_vm2, %v4193_v37, %v4191_v36  ;;  %v1898_v37 = vmul.f32 %v4179_v29, %v4221_v53  ;;  %v2106_v29 = vmul.f32 %v4187_v33, %v4221_v53 }
 0x18d   : > { %v1575_v30 = vmul.f32 %v4385_v10, %v4207_v48  ;;  %vm1588_vm15 = vcmask 908288   ;;  %vm1910_vm2 = vcmask 515072  }
 0x18e   : > { %1582 = vrot.lane.b32.xlu0 %v1574_v11, %s3975_s25  ;;  %v2100_v11 = vsel %vm2099_vm0, %v4189_v34, %v4187_v33  ;;  %v1789_v34 = vsel %vm549_vm1, %v4177_v28, %v4175_v27  ;;  %v1996_v28 = vsel %vm1995_vm4, %v4185_v32, %v4183_v31  ;;  %v2299_v31 = vmul.f32 %v4191_v36, %v4221_v53 }
 0x18f   : > { %v2105_v21 = vmul.f32 %v2100_v11, %v4207_v48  ;;  %v2397_v33 = vsel %vm2396_vm5, %v4197_v40, %v4195_v39  ;;  %v2975_v40 = vmul.f32 %v4157_v18, %v4207_v48  ;;  %vm1703_vm0 = vcmask 900096  }
 0x190   : > { %2305 = vrot.lane.b32.xlu1 %v2297_v45, %s4765_s29  ;;  %s3982_s29 = smov 48   ;;  %v1691_v45 = vmul.f32 %v4171_v25, %v4221_v53  ;;  %vm2207_vm4 = vcmask 449536   ;;  %vm2118_vm5 = vcmask 457728  }
 0x192   : > { %1801 = vrot.lane.b32.xlu0 %v1793_v46, %s4771_s21  ;;  %v2298_v46 = vmul.f32 %v2293_v23, %v4207_v48 }
 0x194   : > { %2513 = vrot.lane.b32.xlu1 %v2505_v47, %s4767_s30  ;;  %s4769_s30 = smov 46   ;;  %v1794_v47 = vmul.f32 %v1789_v34, %v4207_v48 }
 0x196   : > { %2008 = vrot.lane.b32.xlu0 %v2000_v49, %s3981_s28  ;;  %v2403_v49 = vmul.f32 %v4195_v39, %v4221_v53 }
 0x198   : > { %1239 = vrot.lane.b32.xlu1 %v4207_v48, %s3968_s12 }
 0x19a   : > { %2409 = vrot.lane.b32.xlu0 %v2401_v52, %s3982_s29  ;;  %v2501_v52 = vsel %vm2500_vm3, %v4201_v42, %v4199_v41  ;;  %v2788_v42 = vmul.f32 %v831_v2, %v4221_v53  ;;  %v2605_v2 = vsel %vm2604_vm7, %v4205_v44, %v4203_v43  ;;  %vm2014_vm3 = vcmask 506880  }
 0x19b   : > { %v2506_v27 = vmul.f32 %v2501_v52, %v4207_v48  ;;  %vm2311_vm7 = vcmask 441344  }
 0x19c   : > { %2205 = vrot.lane.b32.xlu1 %v4221_v53, %s3969_s13 }
 0x19e   : > { %2617 = vrot.lane.b32.xlu0 %v2609_v54, %s4769_s30  ;;  %s4773_s30 = smov 54   ;;  %v2001_v54 = vmul.f32 %v1996_v28, %v4207_v48 }
 0x1a0   : > { %847 = vrot.lane.b32.xlu1 %v837_v56, %s3970_s14  ;;  %v2611_v56 = vmul.f32 %v4203_v43, %v4221_v53  ;;  %v3160_v43 = vmul.f32 %v4161_v20, %v4207_v48 }
 0x1a2   : > { %1241 = vrot.lane.b32.xlu0 %v4221_v53, %s3968_s12 }
 0x1a4   : > { %1033 = vrot.lane.b32.xlu1 %v1024_v61, %s3971_s15  ;;  %v2787_v61 = vmul.f32 %v4149_v14, %v4207_v48  ;;  %v2507_v14 = vmul.f32 %v4199_v41, %v4221_v53 }
 0x1a6   : > { %2203 = vrot.lane.b32.xlu0 %v4207_v48, %s3969_s13  ;;  %s4774_s13 = smov 47  }
 0x1a8   : > { %1149 = vrot.lane.b32.xlu1 %v1139_v51, %s3972_s16 }
 0x1aa   : > { %3076 = vrot.lane.b32.xlu0 %v4221_v53, %s3968_s12 }
 0x1ac   : > { %1356 = vrot.lane.b32.xlu1 %v1346_v63, %s3974_s24  ;;  %v2402_v63 = vmul.f32 %v2397_v33, %v4207_v48  ;;  %v3786_v33 = vld [vmem:[%s4758_s7 + $0x10] sm:$0xff] }
 0x1ae   : > { %3074 = vrot.lane.b32.xlu0 %v4207_v48, %s3968_s12  ;;  %s4772_s12 = smov 56  }
 0x1b0   : > { %1469 = vrot.lane.b32.xlu1 %v1460_v55, %s3973_s22  ;;  %v2976_v55 = vmul.f32 %v1133_v5, %v4221_v53  ;;  %v2881_v5 = vmul.f32 %v4153_v16, %v4207_v48  ;;  %v3254_v16 = vmul.f32 %v4165_v22, %v4207_v48  ;;  %v3442_v22 = vmul.f32 %v4173_v26, %v4207_v48 }
 0x1b2   : > { %845 = vrot.lane.b32.xlu0 %v836_v3, %s3970_s14 }
 0x1b4   : > { %1586 = vrot.lane.b32.xlu1 %v1576_v58, %s3975_s25  ;;  %v2610_v58 = vmul.f32 %v2605_v2, %v4207_v48 }
 0x1b6   : > { %1035 = vrot.lane.b32.xlu0 %v1025_v4, %s3971_s15  ;;  %v3161_v4 = vmul.f32 %v4368_v7, %v4221_v53 }
 0x1b8   : > { %1699 = vrot.lane.b32.xlu1 %v1690_v13, %s3976_s26 }
 0x1ba   : > { %1147 = vrot.lane.b32.xlu0 %v1138_v6, %s3972_s16  ;;  %v3349_v6 = vmul.f32 %v4385_v10, %v4221_v53 }
 0x1bc   : > { %1805 = vrot.lane.b32.xlu1 %v1795_v15, %s4771_s21 }
 0x1be   : > { %1354 = vrot.lane.b32.xlu0 %v1345_v17, %s3974_s24 }
 0x1c0   : > { %1906 = vrot.lane.b32.xlu1 %v1897_v8, %s3977_s27  ;;  %v3444_v8 = vmul.f32 %v4211_v50, %v4171_v25 }
 0x1c2   : > { %1471 = vrot.lane.b32.xlu0 %v1461_v9, %s3973_s22 }
 0x1c4   : > { %2012 = vrot.lane.b32.xlu1 %v2002_v19, %s3981_s28 }
 0x1c6   : > { %1584 = vrot.lane.b32.xlu0 %v1575_v30, %s3975_s25 }
 0x1c8   : > { %2114 = vrot.lane.b32.xlu1 %v2105_v21, %s4772_s12 }
 0x1ca   : > { %1701 = vrot.lane.b32.xlu0 %v1691_v45, %s3976_s26 }
 0x1cc   : > { %2307 = vrot.lane.b32.xlu1 %v2298_v46, %s4773_s30 }
 0x1ce   : > { %1803 = vrot.lane.b32.xlu0 %v1794_v47, %s4771_s21  ;;  %s4775_s21 = smov 46  }
 0x1d0   : > { %2413 = vrot.lane.b32.xlu1 %v2403_v49, %s3982_s29 }
 0x1d2   : > { %1908 = vrot.lane.b32.xlu0 %v1898_v37, %s3977_s27 }
 0x1d4   : > { %2515 = vrot.lane.b32.xlu1 %v2506_v27, %s4774_s13 }
 0x1d6   : > { %2010 = vrot.lane.b32.xlu0 %v2001_v54, %s3981_s28 }
 0x1d8   : > { %2621 = vrot.lane.b32.xlu1 %v2611_v56, %s4775_s21 }
 0x1da   : > { %2116 = vrot.lane.b32.xlu0 %v2106_v29, %s4772_s12 }
 0x1dc   : > { %2797 = vrot.lane.b32.xlu1 %v2788_v42, %s3970_s14  ;;  %v3782_v42 = vld [vmem:[%s4758_s7 + $0x8] sm:$0xff] }
 0x1de   : > { %2309 = vrot.lane.b32.xlu0 %v2299_v31, %s4773_s30  ;;  %v4432_v32 = vpop.permute.xlu1 %3078 }
 0x1e0   : > { %v4438_v51 = vpop.permute.xlu0 %2201  ;;  %2795 = vrot.lane.b32.xlu1 %v2787_v61, %s3970_s14 }
 0x1e2   : > { %2411 = vrot.lane.b32.xlu0 %v2402_v63, %s3982_s29  ;;  %v4444_v36 = vpop.permute.xlu1 %1237  ;;  %s3845_s29 = sshll.u32 %s4782_s17, 4  ;;  %s4776_s17 = smov 64  }
 0x1e4   : > { %v4446_v1 = vpop.permute.xlu0 %2799  ;;  %2985 = vrot.lane.b32.xlu1 %v2976_v55, %s3972_s16 }
 0x1e6   : > { %2517 = vrot.lane.b32.xlu0 %v2507_v14, %s4774_s13  ;;  %v4452_v39 = vpop.permute.xlu1 %2893  ;;  %s530_s13 = scalar_lea.vmem %s4760_s9, %s3845_s29 }
 0x1e8   : > { %v4458_v3 = vpop.permute.xlu0 %2987  ;;  %2983 = vrot.lane.b32.xlu1 %v2975_v40, %s3972_s16 }
 0x1ea   : > { %2619 = vrot.lane.b32.xlu0 %v2610_v58, %s4775_s21  ;;  %v4465_v41 = vpop.permute.xlu1 %3266 }
 0x1ec   : > { %v4467_v13 = vpop.permute.xlu0 %3172  ;;  %3170 = vrot.lane.b32.xlu1 %v3161_v4, %s3974_s24 }
 0x1ee   : > { %2891 = vrot.lane.b32.xlu0 %v4236_v57, %s3971_s15  ;;  %v1032_v18 = vpop.permute.xlu1 %1031  ;;  %v3348_v57 = vmul.f32 %v4169_v24, %v4207_v48 }
 0x1f0   : > { %v4474_v44 = vpop.permute.xlu0 %3360  ;;  %3168 = vrot.lane.b32.xlu1 %v3160_v43, %s3974_s24  ;;  %v3791_v43 = vld [vmem:[%s4758_s7 + $0x20] sm:$0xff]  ;;  %s539_s24 = scalar_lea.vmem %s4762_s11, %s4075_s23 }
 0x1f2   : > { %2889 = vrot.lane.b32.xlu0 %v2881_v5, %s3971_s15  ;;  %v4482_v15 = vpop.permute.xlu1 %1467  ;;  %s535_s15 = scalar_lea.vmem %s4761_s10, %s4075_s23 }
 0x1f4   : > { %v844_v7 = vpop.permute.xlu0 %843  ;;  %3358 = vrot.lane.b32.xlu1 %v3349_v6, %s3975_s25 }
 0x1f6   : > { %3264 = vrot.lane.b32.xlu0 %v4244_v59, %s3973_s22  ;;  %v4487_v20 = vpop.permute.xlu1 %1697 }
 0x1f8   : > { %v1146_v17 = vpop.permute.xlu0 %1145  ;;  %3356 = vrot.lane.b32.xlu1 %v3348_v57, %s3975_s25  ;;  %v3794_v57 = vld [vmem:[%s4758_s7 + $0x28] sm:$0xff] }
 0x1fa   : > { %3262 = vrot.lane.b32.xlu0 %v3254_v16, %s3973_s22  ;;  %v4495_v60 = vpop.permute.xlu1 %1904 }
 0x1fc   : > { %v4499_v9 = vpop.permute.xlu0 %1352  ;;  %3454 = vrot.lane.b32.xlu1 %v3444_v8, %s3976_s26 }
 0x1fe   : > { %3452 = vrot.lane.b32.xlu0 %v4256_v62, %s3976_s26  ;;  %v4504_v24 = vpop.permute.xlu1 %2112 }
 0x200   : > { %v4506_v59 = vpop.permute.xlu0 %1582 }
 0x202   : > { %3450 = vrot.lane.b32.xlu0 %v3442_v22, %s3976_s26  ;;  %v4511_v19 = vpop.permute.xlu1 %2305 }
 0x204   : > { %v4513_v10 = vpop.permute.xlu0 %1801 }
 0x206   : > { %v4515_v25 = vpop.permute.xlu1 %2513 }
 0x208   : > { %v4517_v50 = vpop.permute.xlu0 %2008 }
 0x20a   : > { %v1240_v30 = vpop.permute.xlu1 %1239 }
 0x20b   : > { %v1244_v40 = vsel %vm1243_vm8, %v4444_v36, %v1240_v30 }
 0x20c   : > { %v4519_v11 = vpop.permute.xlu0 %2409 }
 0x20e   : > { %v4521_v62 = vpop.permute.xlu1 %2205 }
 0x210   : > { %v4523_v21 = vpop.permute.xlu0 %2617 }
 0x212   : > { %v848_v45 = vpop.permute.xlu1 %847 }
 0x214   : > { %v1242_v23 = vpop.permute.xlu0 %1241 }
 0x215   : > { %v1245_v14 = vsel %vm1243_vm8, %v1240_v30, %v1242_v23 }
 0x216   : > { %v1034_v26 = vpop.permute.xlu1 %1033 }
 0x217   : > { %v1038_v63 = vsel %vm1037_vm10, %v1032_v18, %v1034_v26  ;;  %v3789_v18 = vld [vmem:[%s4758_s7 + $0x18] sm:$0xff] }
 0x218   : > { %v4525_v46 = vpop.permute.xlu0 %2203 }
 0x21a   : > { %v1150_v34 = vpop.permute.xlu1 %1149 }
 0x21c   : > { %v3077_v47 = vpop.permute.xlu0 %3076 }
 0x21d   : > { %v4529_v49 = vsel %vm1243_vm8, %v3077_v47, %v4432_v32 }
 0x21e   : > { %v1357_v37 = vpop.permute.xlu1 %1356 }
 0x220   : > { %v3075_v52 = vpop.permute.xlu0 %3074 }
 0x221   : > { %v4532_v27 = vsel %vm1243_vm8, %v3075_v52, %v3077_v47  ;;  %vm2415_vm8 = vcmask 392192  }
 0x222   : > { %v1470_v28 = vpop.permute.xlu1 %1469 }
 0x223   : > { %v1474_v22 = vsel %vm1473_vm14, %v4482_v15, %v1470_v28 }
 0x224   : > { %v846_v54 = vpop.permute.xlu0 %845 }
 0x225   : > { %v850_v56 = vsel %vm849_vm9, %v844_v7, %v846_v54  ;;  %v851_v29 = vsel %vm849_vm9, %v846_v54, %v848_v45 }
 0x226   : > { %888 = vmatprep.subr.mxu0 %v851_v29  ;;  %v1587_v31 = vpop.permute.xlu1 %1586 }
 0x227   : > { %889 = vmatpush1.msra.mxu0 %v850_v56 }
 0x228   : > { %v1036_v32 = vpop.permute.xlu0 %1035  ;;  %3783 = vmatmul.mubr.msk.f32.vlgmr.msra.gmra.mxu0 %vm854_vm12, %v3782_v42  ;;  %v3805_v42 = vld [vmem:[%s4758_s7 + $0x48] sm:$0xff] }
 0x229   : > { %v1039_v61 = vsel %vm1037_vm10, %v1034_v26, %v1036_v32  ;;  %1109 = vmatprep.mubr.f32.mxu0 %v3948_v0 }
 0x22a   : > { %1075 = vmatprep.subr.mxu0 %v1039_v61  ;;  %v1700_v55 = vpop.permute.xlu1 %1699 }
 0x22b   : > { %1076 = vmatpush1.msra.mxu0 %v1038_v63  ;;  %v1704_v52 = vsel %vm1703_vm0, %v4487_v20, %v1700_v55 }
 0x22c   : > { %v1148_v2 = vpop.permute.xlu0 %1147  ;;  %1281 = vmatprep.subr.mxu0 %v1245_v14  ;;  %3787 = vmatmul.mubr.msk.f32.vlgmr.msra.gmra.mxu0 %vm854_vm12, %v3786_v33 }
 0x22d   : > { %v1152_v58 = vsel %vm1151_vm11, %v1146_v17, %v1148_v2  ;;  %1282 = vmatpush1.msra.mxu0 %v1244_v40  ;;  %v1153_v4 = vsel %vm1151_vm11, %v1148_v2, %v1150_v34  ;;  %1315 = vmatprep.mubr.f32.mxu0 %v3948_v0  ;;  %v3800_v34 = vld [vmem:[%s4758_s7 + $0x38] sm:$0xff] }
 0x22e   : > { %1189 = vmatprep.subr.mxu1 %v1153_v4  ;;  %v1806_v36 = vpop.permute.xlu1 %1805  ;;  %v3809_v40 = vld [vmem:[%s4758_s7 + $0x58] sm:$0xff] }
 0x22f   : > { %1190 = vmatpush1.msra.mxu1 %v1152_v58  ;;  %v2208_v58 = vsel %vm2207_vm4, %v4438_v51, %v4525_v46 }
 0x230   : > { %v1355_v5 = vpop.permute.xlu0 %1354  ;;  %3790 = vmatmul.mubr.msk.f32.vlgmr.msra.gmra.mxu1 %vm854_vm12, %v3789_v18  ;;  %3792 = vmatmul.mubr.msk.f32.vlgmr.msra.gmra.mxu0 %vm854_vm12, %v3791_v43  ;;  %v3811_v18 = vld [vmem:[%s4758_s7 + $0x60] sm:$0xff]  ;;  %v3813_v43 = vld [vmem:[%s4758_s7 + $0x68] sm:$0xff] }
 0x231   : > { %v1359_v6 = vsel %vm1358_vm13, %v4499_v9, %v1355_v5  ;;  %v1360_v7 = vsel %vm1358_vm13, %v1355_v5, %v1357_v37  ;;  %1430 = vmatprep.mubr.f32.mxu1 %v3948_v0  ;;  %1545 = vmatprep.mubr.f32.mxu0 %v3948_v0  ;;  %v3797_v9 = vld [vmem:[%s4758_s7 + $0x30] sm:$0xff] }
 0x232   : > { %1396 = vmatprep.subr.mxu1 %v1360_v7  ;;  %v1907_v17 = vpop.permute.xlu1 %1906  ;;  %v3815_v5 = vld [vmem:[%s4758_s7 + $0x70] sm:$0xff] }
 0x233   : > { %1397 = vmatpush1.msra.mxu1 %v1359_v6  ;;  %v1911_v61 = vsel %vm1910_vm2, %v4495_v60, %v1907_v17  ;;  %v2209_v60 = vsel %vm2207_vm4, %v4525_v46, %v4521_v62 }
 0x234   : > { %v1472_v16 = vpop.permute.xlu0 %1471  ;;  %3795 = vmatmul.mubr.msk.f32.vlgmr.msra.gmra.mxu1 %vm854_vm12, %v3794_v57 }
 0x235   : > { %v1475_v8 = vsel %vm1473_vm14, %v1470_v28, %v1472_v16  ;;  %1660 = vmatprep.mubr.f32.mxu1 %v3948_v0  ;;  %v3817_v16 = vld [vmem:[%s4758_s7 + $0x78] sm:$0xff] }
 0x236   : > { %1511 = vmatprep.subr.mxu0 %v1475_v8  ;;  %v2013_v30 = vpop.permute.xlu1 %2012 }
 0x237   : > { %1512 = vmatpush1.msra.mxu0 %v1474_v22  ;;  %v3819_v22 = vld [vmem:[%s4758_s7 + $0x80] sm:$0xff] }
 0x238   : > { %v1585_v45 = vpop.permute.xlu0 %1584  ;;  %3798 = vmatmul.mubr.msk.f32.vlgmr.msra.gmra.mxu0 %vm854_vm12, %v3797_v9 }
 0x239   : > { %v1589_v23 = vsel %vm1588_vm15, %v4506_v59, %v1585_v45  ;;  %v1590_v26 = vsel %vm1588_vm15, %v1585_v45, %v1587_v31  ;;  %1775 = vmatprep.mubr.f32.mxu0 %v3948_v0  ;;  %v3803_v59 = vld [vmem:[%s4758_s7 + $0x40] sm:$0xff]  ;;  %v2705_v45 = vmul.f32 %v4221_v53, %v4130_v35 }
 0x23a   : > { %1626 = vmatprep.subr.mxu1 %v1590_v26  ;;  %v2115_v15 = vpop.permute.xlu1 %2114 }
 0x23b   : > { %1627 = vmatpush1.msra.mxu1 %v1589_v23  ;;  %v2119_v62 = vsel %vm2118_vm5, %v4504_v24, %v2115_v15  ;;  %v2704_v23 = vmul.f32 %v4134_v38, %v4207_v48 }
 0x23c   : > { %v1702_v47 = vpop.permute.xlu0 %1701  ;;  %3801 = vmatmul.mubr.msk.f32.vlgmr.msra.gmra.mxu1 %vm854_vm12, %v3800_v34 }
 0x23d   : > { %v1705_v37 = vsel %vm1703_vm0, %v1700_v55, %v1702_v47  ;;  %1878 = vmatprep.mubr.f32.mxu1 %v3948_v0 }
 0x23e   : > { %1741 = vmatprep.subr.mxu0 %v1705_v37  ;;  %v2308_v28 = vpop.permute.xlu1 %2307 }
 0x23f   : > { %1742 = vmatpush1.msra.mxu0 %v1704_v52  ;;  %v2312_v24 = vsel %vm2311_vm7, %v4511_v19, %v2308_v28 }
 0x240   : > { %v1804_v54 = vpop.permute.xlu0 %1803  ;;  %3804 = vmatmul.mubr.msk.f32.vlgmr.msra.gmra.mxu0 %vm854_vm12, %v3803_v59 }
 0x241   : > { %v1807_v56 = vsel %vm549_vm1, %v4513_v10, %v1804_v54  ;;  %v1808_v29 = vsel %vm549_vm1, %v1804_v54, %v1806_v36  ;;  %1982 = vmatprep.mubr.f32.mxu0 %v3948_v0  ;;  %v3807_v10 = vld [vmem:[%s4758_s7 + $0x50] sm:$0xff] }
 0x242   : > { %1844 = vmatprep.subr.mxu1 %v1808_v29  ;;  %v2414_v31 = vpop.permute.xlu1 %2413 }
 0x243   : > { %1845 = vmatpush1.msra.mxu1 %v1807_v56  ;;  %v3829_v56 = vld [vmem:[%s4758_s7 + $0xa8] sm:$0xff] }
 0x244   : > { %v1909_v20 = vpop.permute.xlu0 %1908  ;;  %3806 = vmatmul.mubr.msk.f32.vlgmr.msra.gmra.mxu1 %vm854_vm12, %v3805_v42 }
 0x245   : > { %v1912_v32 = vsel %vm1910_vm2, %v1907_v17, %v1909_v20  ;;  %2086 = vmatprep.mubr.f32.mxu1 %v3948_v0  ;;  %vm2519_vm2 = vcmask 384000  }
 0x246   : > { %1948 = vmatprep.subr.mxu0 %v1912_v32  ;;  %v2516_v33 = vpop.permute.xlu1 %2515 }
 0x247   : > { %1949 = vmatpush1.msra.mxu0 %v1911_v61  ;;  %v3835_v61 = vld [vmem:[%s4758_s7 + $0xc0] sm:$0xff] }
 0x248   : > { %v2011_v63 = vpop.permute.xlu0 %2010  ;;  %3808 = vmatmul.mubr.msk.f32.vlgmr.msra.gmra.mxu0 %vm854_vm12, %v3807_v10 }
 0x249   : > { %v2015_v55 = vsel %vm2014_vm3, %v4517_v50, %v2011_v63  ;;  %v2016_v14 = vsel %vm2014_vm3, %v2011_v63, %v2013_v30  ;;  %2190 = vmatprep.mubr.f32.mxu0 %v3948_v0  ;;  %vm2623_vm3 = vcmask 375808  }
 0x24a   : > { %2052 = vmatprep.subr.mxu1 %v2016_v14  ;;  %v2622_v2 = vpop.permute.xlu1 %2621 }
 0x24b   : > { %2053 = vmatpush1.msra.mxu1 %v2015_v55 }
 0x24c   : > { %v2117_v4 = vpop.permute.xlu0 %2116  ;;  %2245 = vmatprep.subr.mxu1 %v2209_v60  ;;  %3810 = vmatmul.mubr.msk.f32.vlgmr.msra.gmra.mxu1 %vm854_vm12, %v3809_v40 }
 0x24d   : > { %2246 = vmatpush1.msra.mxu1 %v2208_v58  ;;  %v2120_v50 = vsel %vm2118_vm5, %v2115_v15, %v2117_v4  ;;  %2279 = vmatprep.mubr.f32.mxu1 %v3948_v0  ;;  %v998_v58 = vpop.f32.mrf.mxu1 }
 0x24e   : > { %2156 = vmatprep.subr.mxu0 %v2120_v50  ;;  %v2798_v51 = vpop.permute.xlu1 %2797 }
 0x24f   : > { %2157 = vmatpush1.msra.mxu0 %v2119_v62  ;;  %v2802_v38 = vsel %vm849_vm9, %v2798_v51, %v4446_v1  ;;  %v3825_v1 = vld [vmem:[%s4758_s7 + $0x98] sm:$0xff]  ;;  %v1000_v50 = vpop.f32.mrf.mxu1 }
 0x250   : > { %v2310_v46 = vpop.permute.xlu0 %2309  ;;  %3812 = vmatmul.mubr.msk.f32.vlgmr.msra.gmra.mxu0 %vm854_vm12, %v3811_v18  ;;  %3814 = vmatmul.mubr.msk.f32.vlgmr.msra.gmra.mxu1 %vm854_vm12, %v3813_v43 }
 0x251   : > { %v2313_v36 = vsel %vm2311_vm7, %v2308_v28, %v2310_v46  ;;  %2383 = vmatprep.mubr.f32.mxu0 %v3948_v0  ;;  %2487 = vmatprep.mubr.f32.mxu1 %v3948_v0 }
 0x252   : > { %2349 = vmatprep.subr.mxu0 %v2313_v36  ;;  %v2796_v6 = vpop.permute.xlu1 %2795 }
 0x253   : > { %2350 = vmatpush1.msra.mxu0 %v2312_v24  ;;  %v2801_v48 = vsel %vm849_vm9, %v2796_v6, %v2798_v51 }
 0x254   : > { %v2412_v7 = vpop.permute.xlu0 %2411  ;;  %3816 = vmatmul.mubr.msk.f32.vlgmr.msra.gmra.mxu0 %vm854_vm12, %v3815_v5 }
 0x255   : > { %v2416_v57 = vsel %vm2415_vm8, %v4519_v11, %v2412_v7  ;;  %v2417_v17 = vsel %vm2415_vm8, %v2412_v7, %v2414_v31  ;;  %2591 = vmatprep.mubr.f32.mxu0 %v3948_v0  ;;  %v2520_v11 = vsel %vm2519_vm2, %v4515_v25, %v2516_v33  ;;  %v3821_v25 = vld [vmem:[%s4758_s7 + $0x88] sm:$0xff] }
 0x256   : > { %2453 = vmatprep.subr.mxu1 %v2417_v17  ;;  %v2986_v8 = vpop.permute.xlu1 %2985 }
 0x257   : > { %2454 = vmatpush1.msra.mxu1 %v2416_v57  ;;  %v2990_v37 = vsel %vm1151_vm11, %v2986_v8, %v4458_v3 }
 0x258   : > { %v2518_v19 = vpop.permute.xlu0 %2517  ;;  %3818 = vmatmul.mubr.msk.f32.vlgmr.msra.gmra.mxu1 %vm854_vm12, %v3817_v16 }
 0x259   : > { %v2521_v9 = vsel %vm2519_vm2, %v2516_v33, %v2518_v19  ;;  %2695 = vmatprep.mubr.f32.mxu1 %v3948_v0  ;;  %v3837_v33 = vld [vmem:[%s4758_s7 + $0xc8] sm:$0xff] }
 0x25a   : > { %2557 = vmatprep.subr.mxu0 %v2521_v9  ;;  %v2984_v30 = vpop.permute.xlu1 %2983 }
 0x25b   : > { %2558 = vmatpush1.msra.mxu0 %v2520_v11  ;;  %v2989_v52 = vsel %vm1151_vm11, %v2984_v30, %v2986_v8 }
 0x25c   : > { %v2620_v26 = vpop.permute.xlu0 %2619  ;;  %2741 = vmatprep.subr.mxu0 %v2705_v45  ;;  %3820 = vmatmul.mubr.msk.f32.vlgmr.msra.gmra.mxu0 %vm854_vm12, %v3819_v22 }
 0x25d   : > { %v2624_v34 = vsel %vm2623_vm3, %v4523_v21, %v2620_v26  ;;  %2742 = vmatpush1.msra.mxu0 %v2704_v23  ;;  %v2625_v15 = vsel %vm2623_vm3, %v2620_v26, %v2622_v2  ;;  %2775 = vmatprep.mubr.f32.mxu0 %v3948_v0  ;;  %v3823_v21 = vld [vmem:[%s4758_s7 + $0x90] sm:$0xff] }
 0x25e   : > { %2661 = vmatprep.subr.mxu1 %v2625_v15  ;;  %v3171_v35 = vpop.permute.xlu1 %3170  ;;  %v3839_v2 = vld [vmem:[%s4758_s7 + $0xd0] sm:$0xff] }
 0x25f   : > { %2662 = vmatpush1.msra.mxu1 %v2624_v34  ;;  %v3175_v54 = vsel %vm1358_vm13, %v3171_v35, %v4467_v13 }
 0x260   : > { %v2892_v53 = vpop.permute.xlu0 %2891  ;;  %3822 = vmatmul.mubr.msk.f32.vlgmr.msra.gmra.mxu1 %vm854_vm12, %v3821_v25  ;;  %2838 = vmatprep.subr.mxu1 %v2802_v38 }
 0x261   : > { %2839 = vmatpush1.msra.mxu1 %v2801_v48  ;;  %v2896_v47 = vsel %vm1037_vm10, %v2892_v53, %v4452_v39  ;;  %2872 = vmatprep.mubr.f32.mxu1 %v3948_v0  ;;  %v3827_v39 = vld [vmem:[%s4758_s7 + $0xa0] sm:$0xff] }
 0x262   : > { %2932 = vmatprep.subr.mxu0 %v2896_v47  ;;  %3026 = vmatprep.subr.mxu1 %v2990_v37  ;;  %v3169_v59 = vpop.permute.xlu1 %3168 }
 0x263   : > { %3824 = vmatmul.mubr.msk.f32.vlgmr.msra.gmra.mxu0 %vm854_vm12, %v3823_v21  ;;  %v3174_v31 = vsel %vm1358_vm13, %v3169_v59, %v3171_v35 }
 0x264   : > { %v2890_v28 = vpop.permute.xlu0 %2889  ;;  %3826 = vmatmul.mubr.msk.f32.vlgmr.msra.gmra.mxu1 %vm854_vm12, %v3825_v1  ;;  %2966 = vmatprep.mubr.f32.mxu0 %v3948_v0 }
 0x265   : > { %v2895_v3 = vsel %vm1037_vm10, %v2890_v28, %v2892_v53  ;;  %3027 = vmatpush1.msra.mxu1 %v2989_v52  ;;  %3060 = vmatprep.mubr.f32.mxu1 %v3948_v0 }
 0x266   : > { %3211 = vmatprep.subr.mxu1 %v3175_v54  ;;  %2933 = vmatpush1.msra.mxu0 %v2895_v3  ;;  %v3359_v29 = vpop.permute.xlu1 %3358 }
 0x267   : > { %3117 = vmatprep.subr.mxu0 %v4529_v49  ;;  %3828 = vmatmul.mubr.msk.f32.vlgmr.msra.gmra.mxu0 %vm854_vm12, %v3827_v39  ;;  %v3363_v42 = vsel %vm1588_vm15, %v3359_v29, %v4474_v44  ;;  %v3833_v49 = vld [vmem:[%s4758_s7 + $0xb8] sm:$0xff]  ;;  %v3831_v44 = vld [vmem:[%s4758_s7 + $0xb0] sm:$0xff] }
 0x268   : > { %v3265_v20 = vpop.permute.xlu0 %3264  ;;  %3830 = vmatmul.mubr.msk.f32.vlgmr.msra.gmra.mxu1 %vm854_vm12, %v3829_v56  ;;  %3118 = vmatpush1.msra.mxu0 %v4532_v27 }
 0x269   : > { %3212 = vmatpush1.msra.mxu1 %v3174_v31  ;;  %v3269_v13 = vsel %vm1473_vm14, %v3265_v20, %v4465_v41  ;;  %3245 = vmatprep.mubr.f32.mxu1 %v3948_v0 }
 0x26a   : > { %3399 = vmatprep.subr.mxu1 %v3363_v42  ;;  %3305 = vmatprep.subr.mxu0 %v3269_v13  ;;  %v3357_v32 = vpop.permute.xlu1 %3356 }
 0x26b   : > { %v3362_v10 = vsel %vm1588_vm15, %v3357_v32, %v3359_v29  ;;  %3151 = vmatprep.mubr.f32.mxu0 %v3948_v0 }
 0x26c   : > { %v3263_v27 = vpop.permute.xlu0 %3262  ;;  %3834 = vmatmul.mubr.msk.f32.vlgmr.msra.gmra.mxu1 %vm854_vm12, %v3833_v49  ;;  %3832 = vmatmul.mubr.msk.f32.vlgmr.msra.gmra.mxu0 %vm854_vm12, %v3831_v44 }
 0x26d   : > { %v3268_v41 = vsel %vm1473_vm14, %v3263_v27, %v3265_v20  ;;  %3400 = vmatpush1.msra.mxu1 %v3362_v10  ;;  %3339 = vmatprep.mubr.f32.mxu0 %v3948_v0 }
 0x26e   : > { %3306 = vmatpush1.msra.mxu0 %v3268_v41  ;;  %v3455_v63 = vpop.permute.xlu1 %3454  ;;  %3433 = vmatprep.mubr.f32.mxu1 %v3948_v0 }
 0x270   : > { %v3453_v55 = vpop.permute.xlu0 %3452  ;;  %3836 = vmatmul.mubr.msk.f32.vlgmr.msra.gmra.mxu0 %vm854_vm12, %v3835_v61  ;;  %3838 = vmatmul.mubr.msk.f32.vlgmr.msra.gmra.mxu1 %vm854_vm12, %v3837_v33 }
 0x271   : > { %v3457_v14 = vsel %vm1703_vm0, %v3453_v55, %v3455_v63  ;;  %3527 = vmatprep.mubr.f32.mxu0 %v3948_v0 }
 0x272   : > { %3493 = vmatprep.subr.mxu0 %v3457_v14 }
 0x274   : > { %v3451_v40 = vpop.permute.xlu0 %3450 }
 0x275   : > { %v3456_v60 = vsel %vm1703_vm0, %v3451_v40, %v3453_v55 }
 0x276   : > { %3494 = vmatpush1.msra.mxu0 %v3456_v60 }
 0x277   : > { %3840 = vmatmul.mubr.msk.f32.vlgmr.msra.gmra.mxu0 %vm854_vm12, %v3839_v2 }
 0x2e8   : > { %v924_v4 = vpop.f32.mrf.mxu0 }
 0x2e9   : > { %v999_v18 = vadd.f32 %v998_v58, %v924_v4 }
 0x2ea   : > { %v926_v43 = vpop.f32.mrf.mxu0 }
 0x2eb   : > { %v1001_v62 = vadd.f32 %v1000_v50, %v926_v43 }
 0x2ec   : > { %v1111_v51 = vpop.f32.mrf.mxu0 }
 0x2ed   : > { %v1116_v46 = vadd.f32 %v1111_v51, %v999_v18 }
 0x2ee   : > { %v1113_v0 = vpop.f32.mrf.mxu0 }
 0x2ef   : > { %v1117_v36 = vadd.f32 %v1113_v0, %v1001_v62 }
 0x2f0   : > { %v1225_v5 = vpop.f32.mrf.mxu1  ;;  %v1317_v24 = vpop.f32.mrf.mxu0 }
 0x2f1   : > { %v1230_v6 = vadd.f32 %v1225_v5, %v1116_v46 }
 0x2f2   : > { %v1227_v7 = vpop.f32.mrf.mxu1  ;;  %v1319_v57 = vpop.f32.mrf.mxu0 }
 0x2f3   : > { %v1231_v17 = vadd.f32 %v1227_v7, %v1117_v36  ;;  %v1322_v16 = vadd.f32 %v1317_v24, %v1230_v6 }
 0x2f4   : > { %v1432_v8 = vpop.f32.mrf.mxu1 }
 0x2f5   : > { %v1323_v19 = vadd.f32 %v1319_v57, %v1231_v17  ;;  %v1437_v9 = vadd.f32 %v1432_v8, %v1322_v16 }
 0x2f6   : > { %v1434_v22 = vpop.f32.mrf.mxu1 }
 0x2f7   : > { %v1438_v11 = vadd.f32 %v1434_v22, %v1323_v19 }
 0x2f8   : > { %v1547_v30 = vpop.f32.mrf.mxu0 }
 0x2f9   : > { %v1552_v45 = vadd.f32 %v1547_v30, %v1437_v9 }
 0x2fa   : > { %v1549_v23 = vpop.f32.mrf.mxu0 }
 0x2fb   : > { %v1553_v26 = vadd.f32 %v1549_v23, %v1438_v11 }
 0x2fc   : > { %v1662_v34 = vpop.f32.mrf.mxu1 }
 0x2fd   : > { %v1667_v15 = vadd.f32 %v1662_v34, %v1552_v45 }
 0x2fe   : > { %v1664_v25 = vpop.f32.mrf.mxu1 }
 0x2ff   : > { %v1668_v35 = vadd.f32 %v1664_v25, %v1553_v26 }
 0x300   : > { %v1777_v38 = vpop.f32.mrf.mxu0 }
 0x301   : > { %v1782_v48 = vadd.f32 %v1777_v38, %v1667_v15 }
 0x302   : > { %v1779_v53 = vpop.f32.mrf.mxu0 }
 0x303   : > { %v1783_v21 = vadd.f32 %v1779_v53, %v1668_v35 }
 0x304   : > { %v1880_v47 = vpop.f32.mrf.mxu1 }
 0x305   : > { %v1885_v37 = vadd.f32 %v1880_v47, %v1782_v48 }
 0x306   : > { %v1882_v1 = vpop.f32.mrf.mxu1 }
 0x307   : > { %v1886_v59 = vadd.f32 %v1882_v1, %v1783_v21 }
 0x308   : > { %v1984_v52 = vpop.f32.mrf.mxu0 }
 0x309   : > { %v1989_v28 = vadd.f32 %v1984_v52, %v1885_v37 }
 0x30a   : > { %v1986_v39 = vpop.f32.mrf.mxu0 }
 0x30b   : > { %v1990_v3 = vadd.f32 %v1986_v39, %v1886_v59 }
 0x30c   : > { %v2088_v54 = vpop.f32.mrf.mxu1 }
 0x30d   : > { %v2093_v56 = vadd.f32 %v2088_v54, %v1989_v28 }
 0x30e   : > { %v2090_v29 = vpop.f32.mrf.mxu1 }
 0x30f   : > { %v2094_v42 = vadd.f32 %v2090_v29, %v1990_v3 }
 0x310   : > { %v2192_v31 = vpop.f32.mrf.mxu0  ;;  %v2281_v20 = vpop.f32.mrf.mxu1 }
 0x311   : > { %v2197_v13 = vadd.f32 %v2192_v31, %v2093_v56 }
 0x312   : > { %v2194_v49 = vpop.f32.mrf.mxu0  ;;  %v2283_v44 = vpop.f32.mrf.mxu1 }
 0x313   : > { %v2198_v32 = vadd.f32 %v2194_v49, %v2094_v42  ;;  %v2286_v10 = vadd.f32 %v2281_v20, %v2197_v13  ;;  %v3538_v20 = vld [vmem:[#allocation4] sm:$0xff]  ;;  %v3544_v49 = vld [vmem:[#allocation5] sm:$0xff] }
 0x314   : > { %v2385_v27 = vpop.f32.mrf.mxu0 }
 0x315   : > { %v2287_v41 = vadd.f32 %v2283_v44, %v2198_v32  ;;  %v2390_v61 = vadd.f32 %v2385_v27, %v2286_v10 }
 0x316   : > { %v2387_v33 = vpop.f32.mrf.mxu0 }
 0x317   : > { %v2391_v63 = vadd.f32 %v2387_v33, %v2287_v41 }
 0x318   : > { %v2489_v55 = vpop.f32.mrf.mxu1 }
 0x319   : > { %v2494_v14 = vadd.f32 %v2489_v55, %v2390_v61 }
 0x31a   : > { %v2491_v40 = vpop.f32.mrf.mxu1 }
 0x31b   : > { %v2495_v2 = vadd.f32 %v2491_v40, %v2391_v63 }
 0x31c   : > { %v2593_v60 = vpop.f32.mrf.mxu0 }
 0x31d   : > { %v2598_v58 = vadd.f32 %v2593_v60, %v2494_v14 }
 0x31e   : > { %v2595_v4 = vpop.f32.mrf.mxu0 }
 0x31f   : > { %v2599_v50 = vadd.f32 %v2595_v4, %v2495_v2 }
 0x320   : > { %v2697_v18 = vpop.f32.mrf.mxu1 }
 0x321   : > { %v2702_v43 = vadd.f32 %v2697_v18, %v2598_v58 }
 0x322   : > { %v2699_v62 = vpop.f32.mrf.mxu1 }
 0x323   : > { %v2703_v51 = vadd.f32 %v2699_v62, %v2599_v50  ;;  %v2777_v46 = vpop.f32.mrf.mxu0 }
 0x324   : > { %v2782_v0 = vadd.f32 %v2777_v46, %v2702_v43  ;;  %v2874_v36 = vpop.f32.mrf.mxu1 }
 0x325   : > { %v2779_v5 = vpop.f32.mrf.mxu0 }
 0x326   : > { %v2783_v24 = vadd.f32 %v2779_v5, %v2703_v51  ;;  %v2879_v6 = vadd.f32 %v2874_v36, %v2782_v0  ;;  %v2876_v7 = vpop.f32.mrf.mxu1 }
 0x327   : > { %v2968_v57 = vpop.f32.mrf.mxu0 }
 0x328   : > { %v2880_v17 = vadd.f32 %v2876_v7, %v2783_v24  ;;  %v2973_v16 = vadd.f32 %v2968_v57, %v2879_v6  ;;  %v3062_v8 = vpop.f32.mrf.mxu1 }
 0x329   : > { %v2970_v19 = vpop.f32.mrf.mxu0 }
 0x32a   : > { %v2974_v9 = vadd.f32 %v2970_v19, %v2880_v17  ;;  %v3067_v22 = vadd.f32 %v3062_v8, %v2973_v16  ;;  %v3064_v11 = vpop.f32.mrf.mxu1 }
 0x32c   : > { %v3068_v30 = vadd.f32 %v3064_v11, %v2974_v9  ;;  %v3153_v45 = vpop.f32.mrf.mxu0  ;;  %v3247_v23 = vpop.f32.mrf.mxu1 }
 0x32d   : > { %v3158_v26 = vadd.f32 %v3153_v45, %v3067_v22 }
 0x32e   : > { %v3155_v34 = vpop.f32.mrf.mxu0  ;;  %v3249_v15 = vpop.f32.mrf.mxu1 }
 0x32f   : > { %v3159_v25 = vadd.f32 %v3155_v34, %v3068_v30  ;;  %v3252_v35 = vadd.f32 %v3247_v23, %v3158_v26 }
 0x330   : > { %v3341_v38 = vpop.f32.mrf.mxu0  ;;  %v3435_v53 = vpop.f32.mrf.mxu1 }
 0x331   : > { %v3253_v48 = vadd.f32 %v3249_v15, %v3159_v25  ;;  %v3346_v21 = vadd.f32 %v3341_v38, %v3252_v35 }
 0x332   : > { %v3343_v47 = vpop.f32.mrf.mxu0  ;;  %v3437_v1 = vpop.f32.mrf.mxu1 }
 0x333   : > { %v3347_v37 = vadd.f32 %v3343_v47, %v3253_v48  ;;  %v3440_v59 = vadd.f32 %v3435_v53, %v3346_v21 }
 0x335   : > { %v3441_v28 = vadd.f32 %v3437_v1, %v3347_v37 }
 0x337   : > { %v3529_v52 = vpop.f32.mrf.mxu0 }
 0x338   : > { %v3534_v39 = vadd.f32 %v3529_v52, %v3440_v59 }
 0x339   : > { %v3531_v3 = vpop.f32.mrf.mxu0 }
 0x33a   : > { %3536 = vst [vmem:[%s530_s13] sm:$0xff] %v3534_v39  ;;  %v3535_v54 = vadd.f32 %v3531_v3, %v3441_v28  ;;  %v3545_v56 = vmul.f32 %v3534_v39, %v3534_v39 }
 0x33c   : > { %3537 = vst [vmem:[%s530_s13 + $0x8] sm:$0xff] %v3535_v54  ;;  %v3546_v29 = vmul.f32 %v3535_v54, %v3535_v54  ;;  %v3539_v42 = vadd.f32 %v3535_v54, %v3534_v39 }
 0x33e   : > { %3540 = vadd.xlane.f32.xlu1 %v3539_v42  ;;  %v3547_v31 = vadd.f32 %v3546_v29, %v3545_v56 }
 0x340   : > { %3548 = vadd.xlane.f32.xlu0 %v3547_v31 }
 0x356   : > { %3552 = vrot.lane.b32.xlu0 %v4144_v12, %s4776_s17 }
 0x3c7   : > { %v3541_v13 = vpop.xlane.xlu1 %3540 }
 0x3c8   : > { %v3542_v44 = vadd.f32 %v3541_v13, %v3538_v20 }
 0x3c9   : > { %v3549_v32 = vpop.xlane.xlu0 %3548 }
 0x3ca   : > { %3543 = vst.msk [vmem:[#allocation4] sm:$0xff] %vm551_vm6, %v3542_v44  ;;  %v3550_v10 = vadd.f32 %v3549_v32, %v3544_v49 }
 0x3cc   : > { %3551 = vst.msk [vmem:[#allocation5] sm:$0xff] %vm551_vm6, %v3550_v10 }
 0x3cd   : > { %v3553_v27 = vpop.permute.xlu0 %3552 }
 0x3ce   : > { %3555 = vst.msk [vmem:[#allocation3] sm:$0xff] %vm549_vm1, %v3553_v27 }
 0x3d1   : > { %v3559_v41 = vld [vmem:[#allocation4] sm:$0xff] }
 0x3d2   : > { %v3560_v12 = vmul.f32 0.00390625, %v3559_v41 }
 0x3d3   : > { %v3561_v61 = vld [vmem:[#allocation5] sm:$0xff] }
 0x3d4   : > { %v3563_v33 = vmul.f32 %v3560_v12, %v3560_v12  ;;  %3565 = vst.msk [vmem:[%s535_s15] sm:$0xff] %vm551_vm6, %v3560_v12  ;;  %v3562_v63 = vmul.f32 0.00390625, %v3561_v61 }
 0x3d6   : > { %v3564_v55 = vsub.f32 %v3562_v63, %v3563_v33 }
 0x3d8   : > { %v3566_v14 = vmax.f32 %v3564_v55, 0.0 }
 0x3da   : > { %v3567_v40 = vadd.f32 1e-05, %v3566_v14 }
 0x3dc   : > { %3922 = vrsqrt.f32 %v3567_v40 }
 0x3e9   : > { %v3923_v2 = vpop.eup %3922 }
 0x3ea   : > { %3569 = vst.msk [vmem:[%s539_s24] sm:$0xff] %vm551_vm6, %v3923_v2 }
 0x3eb PF: > { %s22_s19 = sadd.s32 1, %s3946_s19   ;;  %s4777_s17 = smov %s3942_s18 }
 0x3ec   : > { %p19_p5 = scmp.ge.s32.totalorder %s22_s19, 4   ;;  %s4778_s18 = smov %s4780_s20 }
 0x3ee   :  { %21 = sbr.rel (!%p19_p5) target bundleno = 2 (0x2), region = 160 }

</bundles_post_ra>
